<compile_context>
chip_gen: v7x
topology: tpu7x:2x2x1
jax: 0.10.0
libtpu: 0.0.40
codegen_flags: <defaults>
</compile_context>

<pallas_src>
import jax
import jax.numpy as jnp
from jax import lax
from jax.experimental import pallas as pl
from jax.experimental.pallas import tpu as pltpu

N_EMBD = 64
N_HEAD = 4
HEAD_SIZE = N_EMBD // N_HEAD
HIDDEN = 4 * N_EMBD
EPS = 1e-5
NEG_BIG = -1e30  # finite mask value (avoids inf arithmetic / NaN on masked rows)


def _make_block_kernel(b_blk: int, T: int):
    """Kernel factory; b_blk and T are compile-time constants."""
    C = N_EMBD
    scale = HEAD_SIZE ** -0.5

    def block_kernel(x_ref,
                     wqkv_ref, wproj_ref, bproj_ref,
                     ln1w_ref, ln1b_ref, ln2w_ref, ln2b_ref,
                     w1_ref, b1_ref, w2_ref, b2_ref,
                     o_ref,
                     attn_sc):
        x = x_ref[...]                                  # (b_blk*T, C), f32

        # ---- LayerNorm 1 (biased variance, eps inside rsqrt, affine) ----
        mu = jnp.mean(x, axis=-1, keepdims=True)
        var = jnp.mean((x - mu) ** 2, axis=-1, keepdims=True)
        xn = (x - mu) * lax.rsqrt(var + EPS)
        xn = xn * ln1w_ref[...] + ln1b_ref[...]

        # ---- fused QKV projection: one (M, C) @ (C, 3C) matmul ----
        qkv = jnp.dot(xn.astype(jnp.bfloat16), wqkv_ref[...],
                      preferred_element_type=jnp.float32)     # (M, 3C) f32
        q = qkv[:, 0 * C:1 * C].astype(jnp.bfloat16)
        k = qkv[:, 1 * C:2 * C].astype(jnp.bfloat16)
        v = qkv[:, 2 * C:3 * C].astype(jnp.bfloat16)

        # causal additive bias, computed once per grid step (reused B_BLK*H x)
        row = lax.broadcasted_iota(jnp.int32, (T, T), 0)
        col = lax.broadcasted_iota(jnp.int32, (T, T), 1)
        mask_bias = jnp.where(row >= col, 0.0, NEG_BIG).astype(jnp.float32)

        # ---- per (batch, head) attention; tiny (T,T) score tiles ----
        for b in range(b_blk):                      # static loops (unrolled)
            r0 = b * T
            for h in range(N_HEAD):
                c0 = h * HEAD_SIZE
                qh = q[r0:r0 + T, c0:c0 + HEAD_SIZE]
                kh = k[r0:r0 + T, c0:c0 + HEAD_SIZE]
                vh = v[r0:r0 + T, c0:c0 + HEAD_SIZE]
                # q @ k^T via dot_general (contract last dims, no .T relayout)
                s = lax.dot_general(
                    qh, kh, (((1,), (1,)), ((), ())),
                    preferred_element_type=jnp.float32)       # (T, T)
                s = s * scale + mask_bias
                m = jnp.max(s, axis=-1, keepdims=True)
                e = jnp.exp(s - m)                            # EUP
                denom = jnp.sum(e, axis=-1, keepdims=True)
                p = e * pl.reciprocal(denom, approx=True)     # EUP recip
                # attention dropout: identity in eval mode
                head = jnp.dot(p.astype(jnp.bfloat16), vh,
                               preferred_element_type=jnp.float32)  # (T, D)
                # write in place into the (M, C) attention slab (no lane concat)
                attn_sc[r0:r0 + T, c0:c0 + HEAD_SIZE] = head

        # ---- output projection + residual 1 (proj dropout = identity) ----
        attn = attn_sc[...].astype(jnp.bfloat16)              # (M, C)
        sa = jnp.dot(attn, wproj_ref[...],
                     preferred_element_type=jnp.float32) + bproj_ref[...]
        x1 = x + sa

        # ---- LayerNorm 2 ----
        mu2 = jnp.mean(x1, axis=-1, keepdims=True)
        var2 = jnp.mean((x1 - mu2) ** 2, axis=-1, keepdims=True)
        xn2 = (x1 - mu2) * lax.rsqrt(var2 + EPS)
        xn2 = xn2 * ln2w_ref[...] + ln2b_ref[...]

        # ---- FeedForward: Linear -> ReLU -> Linear (-> Dropout = id) ----
        hdn = jnp.dot(xn2.astype(jnp.bfloat16), w1_ref[...],
                      preferred_element_type=jnp.float32) + b1_ref[...]
        hdn = jnp.maximum(hdn, 0.0)
        ff = jnp.dot(hdn.astype(jnp.bfloat16), w2_ref[...],
                     preferred_element_type=jnp.float32) + b2_ref[...]

        # residual 2 — single lane-dense slab store per grid step
        o_ref[...] = (x1 + ff).astype(o_ref.dtype)

    return block_kernel


def _pick_b_blk(B: int, T: int, rows_target: int = 256) -> int:
    """Largest batch block whose rows fit ~rows_target, preferring >=2 grid
    steps (v7x has 2 TensorCores per chip)."""
    cap = max(1, rows_target // max(T, 1))
    divs = [d for d in range(1, B + 1) if B % d == 0 and d <= cap] or [1]
    multi = [d for d in divs if B // d >= 2]
    return max(multi) if multi else max(divs)


def transformer_block(x, params, b_blk=None):
    B, T, C = x.shape
    assert C == N_EMBD
    if b_blk is None:
        b_blk = _pick_b_blk(B, T)
    assert B % b_blk == 0
    M = b_blk * T

    (wq, wk, wv, wproj, bproj, ln1w, ln1b, ln2w, ln2b, w1, b1, w2, b2) = params

    # Host-side param prep: fuse QKV, cast matmul weights to bf16 (biases and
    # LN affine params stay f32 for f32 elementwise math / accumulation).
    wqkv = jnp.concatenate([wq, wk, wv], axis=1).astype(jnp.bfloat16)  # (C, 3C)
    wproj_bf = wproj.astype(jnp.bfloat16)
    w1_bf = w1.astype(jnp.bfloat16)
    w2_bf = w2.astype(jnp.bfloat16)

    # Flatten batch*seq so every dense matmul sees M = b_blk*T rows.
    x2d = x.reshape(B * T, C)

    def full(shape):
        return pl.BlockSpec(shape, lambda i: tuple(0 for _ in shape))

    in_specs = [
        pl.BlockSpec((M, C), lambda i: (i, 0)),              # x (row-blocked)
        full((C, 3 * C)),                                    # Wqkv (bf16)
        full((C, C)), full((1, C)),                          # Wproj (bf16), bproj
        full((1, C)), full((1, C)), full((1, C)), full((1, C)),  # ln1/ln2 w,b
        full((C, HIDDEN)), full((1, HIDDEN)),                # ffn W1 (bf16), b1
        full((HIDDEN, C)), full((1, C)),                     # ffn W2 (bf16), b2
    ]
    out_spec = pl.BlockSpec((M, C), lambda i: (i, 0))

    out2d = pl.pallas_call(
        _make_block_kernel(b_blk, T),
        out_shape=jax.ShapeDtypeStruct((B * T, C), x.dtype),
        grid_spec=pltpu.PrefetchScalarGridSpec(
            num_scalar_prefetch=0,
            grid=(B // b_blk,),
            in_specs=in_specs,
            out_specs=out_spec,
            scratch_shapes=[pltpu.VMEM((M, C), jnp.float32)],  # attention slab
        ),
        compiler_params=pltpu.CompilerParams(
            dimension_semantics=("parallel",)),
    )(x2d, wqkv, wproj_bf, bproj,
      ln1w, ln1b, ln2w, ln2b,
      w1_bf, b1, w2_bf, b2)

    return out2d.reshape(B, T, C)


def reference_block(x, params):
    (wq, wk, wv, wproj, bproj, ln1w, ln1b, ln2w, ln2b, w1, b1, w2, b2) = params

    def ln(v, w, b):
        mu = jnp.mean(v, axis=-1, keepdims=True)
        var = jnp.mean((v - mu) ** 2, axis=-1, keepdims=True)
        return (v - mu) * lax.rsqrt(var + EPS) * w + b

    B, T, C = x.shape
    xn = ln(x, ln1w, ln1b)
    q = xn @ wq; k = xn @ wk; v = xn @ wv
    qh = q.reshape(B, T, N_HEAD, HEAD_SIZE).transpose(0, 2, 1, 3)
    kh = k.reshape(B, T, N_HEAD, HEAD_SIZE).transpose(0, 2, 1, 3)
    vh = v.reshape(B, T, N_HEAD, HEAD_SIZE).transpose(0, 2, 1, 3)
    wei = jnp.einsum('bhqd,bhkd->bhqk', qh, kh) * HEAD_SIZE ** -0.5
    mask = jnp.tril(jnp.ones((T, T), dtype=bool))
    wei = jnp.where(mask, wei, -jnp.inf)
    wei = jax.nn.softmax(wei, axis=-1)
    attn = jnp.einsum('bhqk,bhkd->bhqd', wei, vh).transpose(0, 2, 1, 3).reshape(B, T, C)
    x1 = x + attn @ wproj + bproj
    xn2 = ln(x1, ln2w, ln2b)
    ff = jnp.maximum(xn2 @ w1 + b1, 0.0) @ w2 + b2
    return x1 + ff


def init_params(key):
    ks = jax.random.split(key, 8)
    s = 0.02
    wq = s * jax.random.normal(ks[0], (N_EMBD, N_EMBD), jnp.float32)
    wk = s * jax.random.normal(ks[1], (N_EMBD, N_EMBD), jnp.float32)
    wv = s * jax.random.normal(ks[2], (N_EMBD, N_EMBD), jnp.float32)
    wproj = s * jax.random.normal(ks[3], (N_EMBD, N_EMBD), jnp.float32)
    bproj = s * jax.random.normal(ks[4], (1, N_EMBD), jnp.float32)
    ln1w = jnp.ones((1, N_EMBD), jnp.float32)
    ln1b = jnp.zeros((1, N_EMBD), jnp.float32)
    ln2w = jnp.ones((1, N_EMBD), jnp.float32)
    ln2b = jnp.zeros((1, N_EMBD), jnp.float32)
    w1 = s * jax.random.normal(ks[5], (N_EMBD, HIDDEN), jnp.float32)
    b1 = s * jax.random.normal(ks[6], (1, HIDDEN), jnp.float32)
    w2 = s * jax.random.normal(ks[7], (HIDDEN, N_EMBD), jnp.float32)
    b2 = jnp.zeros((1, N_EMBD), jnp.float32)
    return (wq, wk, wv, wproj, bproj, ln1w, ln1b, ln2w, ln2b, w1, b1, w2, b2)


if __name__ == "__main__":
    key = jax.random.PRNGKey(0)
    kx, kp = jax.random.split(key)
    B, T = 8, 8                       # small shapes; T <= block_size (256)
    x = jax.random.normal(kx, (B, T, N_EMBD), jnp.float32)
    params = init_params(kp)

    out = transformer_block(x, params)       # b_blk auto -> 4, grid=(2,)
    out = jax.block_until_ready(out)

    ref = reference_block(x, params)
    assert out.shape == (B, T, N_EMBD)
    max_err = float(jnp.max(jnp.abs(out - ref)))
    # bf16 MXU inputs (f32 accumulation) + approx reciprocal => slightly looser
    # tolerance than pure-f32.
    assert jnp.allclose(out, ref, atol=2e-2, rtol=2e-2), f"max abs err {max_err}"
    print("KERNEL_OK")
</pallas_src>

<mosaic_0001>
module attributes {stable_mosaic.version = 11 : i64} {
  func.func @block_kernel(%arg0: i32, %arg1: memref<32x64xf32, #tpu.memory_space<vmem>>, %arg2: memref<64x192xbf16, #tpu.memory_space<vmem>>, %arg3: memref<64x64xbf16, #tpu.memory_space<vmem>>, %arg4: memref<1x64xf32, #tpu.memory_space<vmem>>, %arg5: memref<1x64xf32, #tpu.memory_space<vmem>>, %arg6: memref<1x64xf32, #tpu.memory_space<vmem>>, %arg7: memref<1x64xf32, #tpu.memory_space<vmem>>, %arg8: memref<1x64xf32, #tpu.memory_space<vmem>>, %arg9: memref<64x256xbf16, #tpu.memory_space<vmem>>, %arg10: memref<1x256xf32, #tpu.memory_space<vmem>>, %arg11: memref<256x64xbf16, #tpu.memory_space<vmem>>, %arg12: memref<1x64xf32, #tpu.memory_space<vmem>>, %arg13: memref<32x64xf32, #tpu.memory_space<vmem>>, %arg14: memref<32x64xf32, #tpu.memory_space<vmem>>) attributes {dimension_semantics = [#tpu.dimension_semantics<parallel>], iteration_bounds = array<i64: 2>, scalar_prefetch = 0 : i64, scratch_operands = 1 : i64, tpu.core_type = #tpu.core_type<tc>, window_params = [{transform_indices = @transform_0, window_bounds = array<i64: 32, 64>}, {pipeline_mode = #tpu.pipeline_mode<synchronous>, transform_indices = @transform_1, window_bounds = array<i64: 64, 192>}, {pipeline_mode = #tpu.pipeline_mode<synchronous>, transform_indices = @transform_2, window_bounds = array<i64: 64, 64>}, {pipeline_mode = #tpu.pipeline_mode<synchronous>, transform_indices = @transform_3, window_bounds = array<i64: 1, 64>}, {pipeline_mode = #tpu.pipeline_mode<synchronous>, transform_indices = @transform_4, window_bounds = array<i64: 1, 64>}, {pipeline_mode = #tpu.pipeline_mode<synchronous>, transform_indices = @transform_5, window_bounds = array<i64: 1, 64>}, {pipeline_mode = #tpu.pipeline_mode<synchronous>, transform_indices = @transform_6, window_bounds = array<i64: 1, 64>}, {pipeline_mode = #tpu.pipeline_mode<synchronous>, transform_indices = @transform_7, window_bounds = array<i64: 1, 64>}, {pipeline_mode = #tpu.pipeline_mode<synchronous>, transform_indices = @transform_8, window_bounds = array<i64: 64, 256>}, {pipeline_mode = #tpu.pipeline_mode<synchronous>, transform_indices = @transform_9, window_bounds = array<i64: 1, 256>}, {pipeline_mode = #tpu.pipeline_mode<synchronous>, transform_indices = @transform_10, window_bounds = array<i64: 256, 64>}, {pipeline_mode = #tpu.pipeline_mode<synchronous>, transform_indices = @transform_11, window_bounds = array<i64: 1, 64>}, {transform_indices = @transform_12, window_bounds = array<i64: 32, 64>}]} {
    %c0 = arith.constant 0 : index
    %c0_0 = arith.constant 0 : index
    %0 = vector.load %arg1[%c0, %c0_0] : memref<32x64xf32, #tpu.memory_space<vmem>>, vector<32x64xf32>
    %cst = arith.constant dense<0.000000e+00> : vector<32xf32>
    %1 = vector.multi_reduction <add>, %0, %cst [1] : vector<32x64xf32> to vector<32xf32>
    %2 = vector.shape_cast %1 : vector<32xf32> to vector<32x1xf32>
    %cst_1 = arith.constant 6.400000e+01 : f32
    %3 = vector.broadcast %cst_1 : f32 to vector<32x1xf32>
    %4 = arith.divf %2, %3 : vector<32x1xf32>
    %5 = vector.broadcast %4 : vector<32x1xf32> to vector<32x64xf32>
    %6 = arith.subf %0, %5 : vector<32x64xf32>
    %7 = arith.mulf %6, %6 : vector<32x64xf32>
    %cst_2 = arith.constant dense<0.000000e+00> : vector<32xf32>
    %8 = vector.multi_reduction <add>, %7, %cst_2 [1] : vector<32x64xf32> to vector<32xf32>
    %9 = vector.shape_cast %8 : vector<32xf32> to vector<32x1xf32>
    %cst_3 = arith.constant 6.400000e+01 : f32
    %10 = vector.broadcast %cst_3 : f32 to vector<32x1xf32>
    %11 = arith.divf %9, %10 : vector<32x1xf32>
    %12 = vector.broadcast %4 : vector<32x1xf32> to vector<32x64xf32>
    %13 = arith.subf %0, %12 : vector<32x64xf32>
    %cst_4 = arith.constant 9.99999974E-6 : f32
    %14 = vector.broadcast %cst_4 : f32 to vector<32x1xf32>
    %15 = arith.addf %11, %14 : vector<32x1xf32>
    %16 = math.rsqrt %15 : vector<32x1xf32>
    %17 = vector.broadcast %16 : vector<32x1xf32> to vector<32x64xf32>
    %18 = arith.mulf %13, %17 : vector<32x64xf32>
    %c0_5 = arith.constant 0 : index
    %c0_6 = arith.constant 0 : index
    %19 = vector.load %arg5[%c0_5, %c0_6] : memref<1x64xf32, #tpu.memory_space<vmem>>, vector<1x64xf32>
    %20 = vector.broadcast %19 : vector<1x64xf32> to vector<32x64xf32>
    %21 = arith.mulf %18, %20 : vector<32x64xf32>
    %c0_7 = arith.constant 0 : index
    %c0_8 = arith.constant 0 : index
    %22 = vector.load %arg6[%c0_7, %c0_8] : memref<1x64xf32, #tpu.memory_space<vmem>>, vector<1x64xf32>
    %23 = vector.broadcast %22 : vector<1x64xf32> to vector<32x64xf32>
    %24 = arith.addf %21, %23 : vector<32x64xf32>
    %25 = arith.truncf %24 : vector<32x64xf32> to vector<32x64xbf16>
    %c0_9 = arith.constant 0 : index
    %c0_10 = arith.constant 0 : index
    %26 = vector.load %arg2[%c0_9, %c0_10] : memref<64x192xbf16, #tpu.memory_space<vmem>>, vector<64x192xbf16>
    %cst_11 = arith.constant dense<0.000000e+00> : vector<32x192xf32>
    %27 = tpu.matmul %25, %26, %cst_11 {dimension_numbers = #tpu.dot_dimension_numbers<[1], [0], [0], [1], [0, 0, 1, 1], [], []>} : vector<32x64xbf16>, vector<64x192xbf16>, vector<32x192xf32> -> vector<32x192xf32>
    %28 = vector.extract_strided_slice %27 {offsets = [0, 0], sizes = [32, 64], strides = [1, 1]} : vector<32x192xf32> to vector<32x64xf32>
    %29 = arith.truncf %28 : vector<32x64xf32> to vector<32x64xbf16>
    %30 = vector.extract_strided_slice %27 {offsets = [0, 64], sizes = [32, 64], strides = [1, 1]} : vector<32x192xf32> to vector<32x64xf32>
    %31 = arith.truncf %30 : vector<32x64xf32> to vector<32x64xbf16>
    %32 = vector.extract_strided_slice %27 {offsets = [0, 128], sizes = [32, 64], strides = [1, 1]} : vector<32x192xf32> to vector<32x64xf32>
    %33 = arith.truncf %32 : vector<32x64xf32> to vector<32x64xbf16>
    %34 = tpu.iota {dimensions = array<i32: 0>} : vector<8x8xi32>
    %35 = tpu.iota {dimensions = array<i32: 1>} : vector<8x8xi32>
    %36 = arith.cmpi sge, %34, %35 : vector<8x8xi32>
    %cst_12 = arith.constant 0.000000e+00 : f32
    %cst_13 = arith.constant -1.000000e+30 : f32
    %37 = vector.broadcast %cst_12 : f32 to vector<8x8xf32>
    %38 = vector.broadcast %cst_13 : f32 to vector<8x8xf32>
    %39 = arith.select %36, %37, %38 : vector<8x8xi1>, vector<8x8xf32>
    %40 = vector.extract_strided_slice %29 {offsets = [0, 0], sizes = [8, 16], strides = [1, 1]} : vector<32x64xbf16> to vector<8x16xbf16>
    %41 = vector.extract_strided_slice %31 {offsets = [0, 0], sizes = [8, 16], strides = [1, 1]} : vector<32x64xbf16> to vector<8x16xbf16>
    %42 = vector.extract_strided_slice %33 {offsets = [0, 0], sizes = [8, 16], strides = [1, 1]} : vector<32x64xbf16> to vector<8x16xbf16>
    %cst_14 = arith.constant dense<0.000000e+00> : vector<8x8xf32>
    %43 = tpu.matmul %40, %41, %cst_14 {dimension_numbers = #tpu.dot_dimension_numbers<[1], [1], [0], [0], [0, 0, 1, 0], [], []>} : vector<8x16xbf16>, vector<8x16xbf16>, vector<8x8xf32> -> vector<8x8xf32>
    %cst_15 = arith.constant 2.500000e-01 : f32
    %44 = vector.broadcast %cst_15 : f32 to vector<8x8xf32>
    %45 = arith.mulf %43, %44 : vector<8x8xf32>
    %46 = arith.addf %45, %39 : vector<8x8xf32>
    %cst_16 = arith.constant dense<0xFF800000> : vector<8xf32>
    %47 = vector.multi_reduction <maximumf>, %46, %cst_16 [1] : vector<8x8xf32> to vector<8xf32>
    %48 = vector.shape_cast %47 : vector<8xf32> to vector<8x1xf32>
    %49 = vector.broadcast %48 : vector<8x1xf32> to vector<8x8xf32>
    %50 = arith.subf %46, %49 : vector<8x8xf32>
    %51 = math.exp %50 : vector<8x8xf32>
    %cst_17 = arith.constant dense<0.000000e+00> : vector<8xf32>
    %52 = vector.multi_reduction <add>, %51, %cst_17 [1] : vector<8x8xf32> to vector<8xf32>
    %53 = vector.shape_cast %52 : vector<8xf32> to vector<8x1xf32>
    %54 = tpu.reciprocal %53 {approx = true} : vector<8x1xf32> -> vector<8x1xf32>
    %55 = vector.broadcast %54 : vector<8x1xf32> to vector<8x8xf32>
    %56 = arith.mulf %51, %55 : vector<8x8xf32>
    %57 = arith.truncf %56 : vector<8x8xf32> to vector<8x8xbf16>
    %cst_18 = arith.constant dense<0.000000e+00> : vector<8x16xf32>
    %58 = tpu.matmul %57, %42, %cst_18 {dimension_numbers = #tpu.dot_dimension_numbers<[1], [0], [0], [1], [0, 0, 1, 1], [], []>} : vector<8x8xbf16>, vector<8x16xbf16>, vector<8x16xf32> -> vector<8x16xf32>
    %c0_19 = arith.constant 0 : index
    %c0_20 = arith.constant 0 : index
    %59 = vector.load %arg14[%c0_19, %c0_20] : memref<32x64xf32, #tpu.memory_space<vmem>>, vector<8x16xf32>
    tpu.vector_store %arg14[%c0_19, %c0_20], %58 {strides = array<i32>} : memref<32x64xf32, #tpu.memory_space<vmem>>, vector<8x16xf32>,
    %60 = vector.extract_strided_slice %29 {offsets = [0, 16], sizes = [8, 16], strides = [1, 1]} : vector<32x64xbf16> to vector<8x16xbf16>
    %61 = vector.extract_strided_slice %31 {offsets = [0, 16], sizes = [8, 16], strides = [1, 1]} : vector<32x64xbf16> to vector<8x16xbf16>
    %62 = vector.extract_strided_slice %33 {offsets = [0, 16], sizes = [8, 16], strides = [1, 1]} : vector<32x64xbf16> to vector<8x16xbf16>
    %cst_21 = arith.constant dense<0.000000e+00> : vector<8x8xf32>
    %63 = tpu.matmul %60, %61, %cst_21 {dimension_numbers = #tpu.dot_dimension_numbers<[1], [1], [0], [0], [0, 0, 1, 0], [], []>} : vector<8x16xbf16>, vector<8x16xbf16>, vector<8x8xf32> -> vector<8x8xf32>
    %cst_22 = arith.constant 2.500000e-01 : f32
    %64 = vector.broadcast %cst_22 : f32 to vector<8x8xf32>
    %65 = arith.mulf %63, %64 : vector<8x8xf32>
    %66 = arith.addf %65, %39 : vector<8x8xf32>
    %cst_23 = arith.constant dense<0xFF800000> : vector<8xf32>
    %67 = vector.multi_reduction <maximumf>, %66, %cst_23 [1] : vector<8x8xf32> to vector<8xf32>
    %68 = vector.shape_cast %67 : vector<8xf32> to vector<8x1xf32>
    %69 = vector.broadcast %68 : vector<8x1xf32> to vector<8x8xf32>
    %70 = arith.subf %66, %69 : vector<8x8xf32>
    %71 = math.exp %70 : vector<8x8xf32>
    %cst_24 = arith.constant dense<0.000000e+00> : vector<8xf32>
    %72 = vector.multi_reduction <add>, %71, %cst_24 [1] : vector<8x8xf32> to vector<8xf32>
    %73 = vector.shape_cast %72 : vector<8xf32> to vector<8x1xf32>
    %74 = tpu.reciprocal %73 {approx = true} : vector<8x1xf32> -> vector<8x1xf32>
    %75 = vector.broadcast %74 : vector<8x1xf32> to vector<8x8xf32>
    %76 = arith.mulf %71, %75 : vector<8x8xf32>
    %77 = arith.truncf %76 : vector<8x8xf32> to vector<8x8xbf16>
    %cst_25 = arith.constant dense<0.000000e+00> : vector<8x16xf32>
    %78 = tpu.matmul %77, %62, %cst_25 {dimension_numbers = #tpu.dot_dimension_numbers<[1], [0], [0], [1], [0, 0, 1, 1], [], []>} : vector<8x8xbf16>, vector<8x16xbf16>, vector<8x16xf32> -> vector<8x16xf32>
    %c0_26 = arith.constant 0 : index
    %c16 = arith.constant 16 : index
    %79 = vector.load %arg14[%c0_26, %c16] : memref<32x64xf32, #tpu.memory_space<vmem>>, vector<8x16xf32>
    tpu.vector_store %arg14[%c0_26, %c16], %78 {strides = array<i32>} : memref<32x64xf32, #tpu.memory_space<vmem>>, vector<8x16xf32>,
    %80 = vector.extract_strided_slice %29 {offsets = [0, 32], sizes = [8, 16], strides = [1, 1]} : vector<32x64xbf16> to vector<8x16xbf16>
    %81 = vector.extract_strided_slice %31 {offsets = [0, 32], sizes = [8, 16], strides = [1, 1]} : vector<32x64xbf16> to vector<8x16xbf16>
    %82 = vector.extract_strided_slice %33 {offsets = [0, 32], sizes = [8, 16], strides = [1, 1]} : vector<32x64xbf16> to vector<8x16xbf16>
    %cst_27 = arith.constant dense<0.000000e+00> : vector<8x8xf32>
    %83 = tpu.matmul %80, %81, %cst_27 {dimension_numbers = #tpu.dot_dimension_numbers<[1], [1], [0], [0], [0, 0, 1, 0], [], []>} : vector<8x16xbf16>, vector<8x16xbf16>, vector<8x8xf32> -> vector<8x8xf32>
    %cst_28 = arith.constant 2.500000e-01 : f32
    %84 = vector.broadcast %cst_28 : f32 to vector<8x8xf32>
    %85 = arith.mulf %83, %84 : vector<8x8xf32>
    %86 = arith.addf %85, %39 : vector<8x8xf32>
    %cst_29 = arith.constant dense<0xFF800000> : vector<8xf32>
    %87 = vector.multi_reduction <maximumf>, %86, %cst_29 [1] : vector<8x8xf32> to vector<8xf32>
    %88 = vector.shape_cast %87 : vector<8xf32> to vector<8x1xf32>
    %89 = vector.broadcast %88 : vector<8x1xf32> to vector<8x8xf32>
    %90 = arith.subf %86, %89 : vector<8x8xf32>
    %91 = math.exp %90 : vector<8x8xf32>
    %cst_30 = arith.constant dense<0.000000e+00> : vector<8xf32>
    %92 = vector.multi_reduction <add>, %91, %cst_30 [1] : vector<8x8xf32> to vector<8xf32>
    %93 = vector.shape_cast %92 : vector<8xf32> to vector<8x1xf32>
    %94 = tpu.reciprocal %93 {approx = true} : vector<8x1xf32> -> vector<8x1xf32>
    %95 = vector.broadcast %94 : vector<8x1xf32> to vector<8x8xf32>
    %96 = arith.mulf %91, %95 : vector<8x8xf32>
    %97 = arith.truncf %96 : vector<8x8xf32> to vector<8x8xbf16>
    %cst_31 = arith.constant dense<0.000000e+00> : vector<8x16xf32>
    %98 = tpu.matmul %97, %82, %cst_31 {dimension_numbers = #tpu.dot_dimension_numbers<[1], [0], [0], [1], [0, 0, 1, 1], [], []>} : vector<8x8xbf16>, vector<8x16xbf16>, vector<8x16xf32> -> vector<8x16xf32>
    %c0_32 = arith.constant 0 : index
    %c32 = arith.constant 32 : index
    %99 = vector.load %arg14[%c0_32, %c32] : memref<32x64xf32, #tpu.memory_space<vmem>>, vector<8x16xf32>
    tpu.vector_store %arg14[%c0_32, %c32], %98 {strides = array<i32>} : memref<32x64xf32, #tpu.memory_space<vmem>>, vector<8x16xf32>,
    %100 = vector.extract_strided_slice %29 {offsets = [0, 48], sizes = [8, 16], strides = [1, 1]} : vector<32x64xbf16> to vector<8x16xbf16>
    %101 = vector.extract_strided_slice %31 {offsets = [0, 48], sizes = [8, 16], strides = [1, 1]} : vector<32x64xbf16> to vector<8x16xbf16>
    %102 = vector.extract_strided_slice %33 {offsets = [0, 48], sizes = [8, 16], strides = [1, 1]} : vector<32x64xbf16> to vector<8x16xbf16>
    %cst_33 = arith.constant dense<0.000000e+00> : vector<8x8xf32>
    %103 = tpu.matmul %100, %101, %cst_33 {dimension_numbers = #tpu.dot_dimension_numbers<[1], [1], [0], [0], [0, 0, 1, 0], [], []>} : vector<8x16xbf16>, vector<8x16xbf16>, vector<8x8xf32> -> vector<8x8xf32>
    %cst_34 = arith.constant 2.500000e-01 : f32
    %104 = vector.broadcast %cst_34 : f32 to vector<8x8xf32>
    %105 = arith.mulf %103, %104 : vector<8x8xf32>
    %106 = arith.addf %105, %39 : vector<8x8xf32>
    %cst_35 = arith.constant dense<0xFF800000> : vector<8xf32>
    %107 = vector.multi_reduction <maximumf>, %106, %cst_35 [1] : vector<8x8xf32> to vector<8xf32>
    %108 = vector.shape_cast %107 : vector<8xf32> to vector<8x1xf32>
    %109 = vector.broadcast %108 : vector<8x1xf32> to vector<8x8xf32>
    %110 = arith.subf %106, %109 : vector<8x8xf32>
    %111 = math.exp %110 : vector<8x8xf32>
    %cst_36 = arith.constant dense<0.000000e+00> : vector<8xf32>
    %112 = vector.multi_reduction <add>, %111, %cst_36 [1] : vector<8x8xf32> to vector<8xf32>
    %113 = vector.shape_cast %112 : vector<8xf32> to vector<8x1xf32>
    %114 = tpu.reciprocal %113 {approx = true} : vector<8x1xf32> -> vector<8x1xf32>
    %115 = vector.broadcast %114 : vector<8x1xf32> to vector<8x8xf32>
    %116 = arith.mulf %111, %115 : vector<8x8xf32>
    %117 = arith.truncf %116 : vector<8x8xf32> to vector<8x8xbf16>
    %cst_37 = arith.constant dense<0.000000e+00> : vector<8x16xf32>
    %118 = tpu.matmul %117, %102, %cst_37 {dimension_numbers = #tpu.dot_dimension_numbers<[1], [0], [0], [1], [0, 0, 1, 1], [], []>} : vector<8x8xbf16>, vector<8x16xbf16>, vector<8x16xf32> -> vector<8x16xf32>
    %c0_38 = arith.constant 0 : index
    %c48 = arith.constant 48 : index
    %119 = vector.load %arg14[%c0_38, %c48] : memref<32x64xf32, #tpu.memory_space<vmem>>, vector<8x16xf32>
    tpu.vector_store %arg14[%c0_38, %c48], %118 {strides = array<i32>} : memref<32x64xf32, #tpu.memory_space<vmem>>, vector<8x16xf32>,
    %120 = vector.extract_strided_slice %29 {offsets = [8, 0], sizes = [8, 16], strides = [1, 1]} : vector<32x64xbf16> to vector<8x16xbf16>
    %121 = vector.extract_strided_slice %31 {offsets = [8, 0], sizes = [8, 16], strides = [1, 1]} : vector<32x64xbf16> to vector<8x16xbf16>
    %122 = vector.extract_strided_slice %33 {offsets = [8, 0], sizes = [8, 16], strides = [1, 1]} : vector<32x64xbf16> to vector<8x16xbf16>
    %cst_39 = arith.constant dense<0.000000e+00> : vector<8x8xf32>
    %123 = tpu.matmul %120, %121, %cst_39 {dimension_numbers = #tpu.dot_dimension_numbers<[1], [1], [0], [0], [0, 0, 1, 0], [], []>} : vector<8x16xbf16>, vector<8x16xbf16>, vector<8x8xf32> -> vector<8x8xf32>
    %cst_40 = arith.constant 2.500000e-01 : f32
    %124 = vector.broadcast %cst_40 : f32 to vector<8x8xf32>
    %125 = arith.mulf %123, %124 : vector<8x8xf32>
    %126 = arith.addf %125, %39 : vector<8x8xf32>
    %cst_41 = arith.constant dense<0xFF800000> : vector<8xf32>
    %127 = vector.multi_reduction <maximumf>, %126, %cst_41 [1] : vector<8x8xf32> to vector<8xf32>
    %128 = vector.shape_cast %127 : vector<8xf32> to vector<8x1xf32>
    %129 = vector.broadcast %128 : vector<8x1xf32> to vector<8x8xf32>
    %130 = arith.subf %126, %129 : vector<8x8xf32>
    %131 = math.exp %130 : vector<8x8xf32>
    %cst_42 = arith.constant dense<0.000000e+00> : vector<8xf32>
    %132 = vector.multi_reduction <add>, %131, %cst_42 [1] : vector<8x8xf32> to vector<8xf32>
    %133 = vector.shape_cast %132 : vector<8xf32> to vector<8x1xf32>
    %134 = tpu.reciprocal %133 {approx = true} : vector<8x1xf32> -> vector<8x1xf32>
    %135 = vector.broadcast %134 : vector<8x1xf32> to vector<8x8xf32>
    %136 = arith.mulf %131, %135 : vector<8x8xf32>
    %137 = arith.truncf %136 : vector<8x8xf32> to vector<8x8xbf16>
    %cst_43 = arith.constant dense<0.000000e+00> : vector<8x16xf32>
    %138 = tpu.matmul %137, %122, %cst_43 {dimension_numbers = #tpu.dot_dimension_numbers<[1], [0], [0], [1], [0, 0, 1, 1], [], []>} : vector<8x8xbf16>, vector<8x16xbf16>, vector<8x16xf32> -> vector<8x16xf32>
    %c8 = arith.constant 8 : index
    %c0_44 = arith.constant 0 : index
    %139 = vector.load %arg14[%c8, %c0_44] : memref<32x64xf32, #tpu.memory_space<vmem>>, vector<8x16xf32>
    tpu.vector_store %arg14[%c8, %c0_44], %138 {strides = array<i32>} : memref<32x64xf32, #tpu.memory_space<vmem>>, vector<8x16xf32>,
    %140 = vector.extract_strided_slice %29 {offsets = [8, 16], sizes = [8, 16], strides = [1, 1]} : vector<32x64xbf16> to vector<8x16xbf16>
    %141 = vector.extract_strided_slice %31 {offsets = [8, 16], sizes = [8, 16], strides = [1, 1]} : vector<32x64xbf16> to vector<8x16xbf16>
    %142 = vector.extract_strided_slice %33 {offsets = [8, 16], sizes = [8, 16], strides = [1, 1]} : vector<32x64xbf16> to vector<8x16xbf16>
    %cst_45 = arith.constant dense<0.000000e+00> : vector<8x8xf32>
    %143 = tpu.matmul %140, %141, %cst_45 {dimension_numbers = #tpu.dot_dimension_numbers<[1], [1], [0], [0], [0, 0, 1, 0], [], []>} : vector<8x16xbf16>, vector<8x16xbf16>, vector<8x8xf32> -> vector<8x8xf32>
    %cst_46 = arith.constant 2.500000e-01 : f32
    %144 = vector.broadcast %cst_46 : f32 to vector<8x8xf32>
    %145 = arith.mulf %143, %144 : vector<8x8xf32>
    %146 = arith.addf %145, %39 : vector<8x8xf32>
    %cst_47 = arith.constant dense<0xFF800000> : vector<8xf32>
    %147 = vector.multi_reduction <maximumf>, %146, %cst_47 [1] : vector<8x8xf32> to vector<8xf32>
    %148 = vector.shape_cast %147 : vector<8xf32> to vector<8x1xf32>
    %149 = vector.broadcast %148 : vector<8x1xf32> to vector<8x8xf32>
    %150 = arith.subf %146, %149 : vector<8x8xf32>
    %151 = math.exp %150 : vector<8x8xf32>
    %cst_48 = arith.constant dense<0.000000e+00> : vector<8xf32>
    %152 = vector.multi_reduction <add>, %151, %cst_48 [1] : vector<8x8xf32> to vector<8xf32>
    %153 = vector.shape_cast %152 : vector<8xf32> to vector<8x1xf32>
    %154 = tpu.reciprocal %153 {approx = true} : vector<8x1xf32> -> vector<8x1xf32>
    %155 = vector.broadcast %154 : vector<8x1xf32> to vector<8x8xf32>
    %156 = arith.mulf %151, %155 : vector<8x8xf32>
    %157 = arith.truncf %156 : vector<8x8xf32> to vector<8x8xbf16>
    %cst_49 = arith.constant dense<0.000000e+00> : vector<8x16xf32>
    %158 = tpu.matmul %157, %142, %cst_49 {dimension_numbers = #tpu.dot_dimension_numbers<[1], [0], [0], [1], [0, 0, 1, 1], [], []>} : vector<8x8xbf16>, vector<8x16xbf16>, vector<8x16xf32> -> vector<8x16xf32>
    %c8_50 = arith.constant 8 : index
    %c16_51 = arith.constant 16 : index
    %159 = vector.load %arg14[%c8_50, %c16_51] : memref<32x64xf32, #tpu.memory_space<vmem>>, vector<8x16xf32>
    tpu.vector_store %arg14[%c8_50, %c16_51], %158 {strides = array<i32>} : memref<32x64xf32, #tpu.memory_space<vmem>>, vector<8x16xf32>,
    %160 = vector.extract_strided_slice %29 {offsets = [8, 32], sizes = [8, 16], strides = [1, 1]} : vector<32x64xbf16> to vector<8x16xbf16>
    %161 = vector.extract_strided_slice %31 {offsets = [8, 32], sizes = [8, 16], strides = [1, 1]} : vector<32x64xbf16> to vector<8x16xbf16>
    %162 = vector.extract_strided_slice %33 {offsets = [8, 32], sizes = [8, 16], strides = [1, 1]} : vector<32x64xbf16> to vector<8x16xbf16>
    %cst_52 = arith.constant dense<0.000000e+00> : vector<8x8xf32>
    %163 = tpu.matmul %160, %161, %cst_52 {dimension_numbers = #tpu.dot_dimension_numbers<[1], [1], [0], [0], [0, 0, 1, 0], [], []>} : vector<8x16xbf16>, vector<8x16xbf16>, vector<8x8xf32> -> vector<8x8xf32>
    %cst_53 = arith.constant 2.500000e-01 : f32
    %164 = vector.broadcast %cst_53 : f32 to vector<8x8xf32>
    %165 = arith.mulf %163, %164 : vector<8x8xf32>
    %166 = arith.addf %165, %39 : vector<8x8xf32>
    %cst_54 = arith.constant dense<0xFF800000> : vector<8xf32>
    %167 = vector.multi_reduction <maximumf>, %166, %cst_54 [1] : vector<8x8xf32> to vector<8xf32>
    %168 = vector.shape_cast %167 : vector<8xf32> to vector<8x1xf32>
    %169 = vector.broadcast %168 : vector<8x1xf32> to vector<8x8xf32>
    %170 = arith.subf %166, %169 : vector<8x8xf32>
    %171 = math.exp %170 : vector<8x8xf32>
    %cst_55 = arith.constant dense<0.000000e+00> : vector<8xf32>
    %172 = vector.multi_reduction <add>, %171, %cst_55 [1] : vector<8x8xf32> to vector<8xf32>
    %173 = vector.shape_cast %172 : vector<8xf32> to vector<8x1xf32>
    %174 = tpu.reciprocal %173 {approx = true} : vector<8x1xf32> -> vector<8x1xf32>
    %175 = vector.broadcast %174 : vector<8x1xf32> to vector<8x8xf32>
    %176 = arith.mulf %171, %175 : vector<8x8xf32>
    %177 = arith.truncf %176 : vector<8x8xf32> to vector<8x8xbf16>
    %cst_56 = arith.constant dense<0.000000e+00> : vector<8x16xf32>
    %178 = tpu.matmul %177, %162, %cst_56 {dimension_numbers = #tpu.dot_dimension_numbers<[1], [0], [0], [1], [0, 0, 1, 1], [], []>} : vector<8x8xbf16>, vector<8x16xbf16>, vector<8x16xf32> -> vector<8x16xf32>
    %c8_57 = arith.constant 8 : index
    %c32_58 = arith.constant 32 : index
    %179 = vector.load %arg14[%c8_57, %c32_58] : memref<32x64xf32, #tpu.memory_space<vmem>>, vector<8x16xf32>
    tpu.vector_store %arg14[%c8_57, %c32_58], %178 {strides = array<i32>} : memref<32x64xf32, #tpu.memory_space<vmem>>, vector<8x16xf32>,
    %180 = vector.extract_strided_slice %29 {offsets = [8, 48], sizes = [8, 16], strides = [1, 1]} : vector<32x64xbf16> to vector<8x16xbf16>
    %181 = vector.extract_strided_slice %31 {offsets = [8, 48], sizes = [8, 16], strides = [1, 1]} : vector<32x64xbf16> to vector<8x16xbf16>
    %182 = vector.extract_strided_slice %33 {offsets = [8, 48], sizes = [8, 16], strides = [1, 1]} : vector<32x64xbf16> to vector<8x16xbf16>
    %cst_59 = arith.constant dense<0.000000e+00> : vector<8x8xf32>
    %183 = tpu.matmul %180, %181, %cst_59 {dimension_numbers = #tpu.dot_dimension_numbers<[1], [1], [0], [0], [0, 0, 1, 0], [], []>} : vector<8x16xbf16>, vector<8x16xbf16>, vector<8x8xf32> -> vector<8x8xf32>
    %cst_60 = arith.constant 2.500000e-01 : f32
    %184 = vector.broadcast %cst_60 : f32 to vector<8x8xf32>
    %185 = arith.mulf %183, %184 : vector<8x8xf32>
    %186 = arith.addf %185, %39 : vector<8x8xf32>
    %cst_61 = arith.constant dense<0xFF800000> : vector<8xf32>
    %187 = vector.multi_reduction <maximumf>, %186, %cst_61 [1] : vector<8x8xf32> to vector<8xf32>
    %188 = vector.shape_cast %187 : vector<8xf32> to vector<8x1xf32>
    %189 = vector.broadcast %188 : vector<8x1xf32> to vector<8x8xf32>
    %190 = arith.subf %186, %189 : vector<8x8xf32>
    %191 = math.exp %190 : vector<8x8xf32>
    %cst_62 = arith.constant dense<0.000000e+00> : vector<8xf32>
    %192 = vector.multi_reduction <add>, %191, %cst_62 [1] : vector<8x8xf32> to vector<8xf32>
    %193 = vector.shape_cast %192 : vector<8xf32> to vector<8x1xf32>
    %194 = tpu.reciprocal %193 {approx = true} : vector<8x1xf32> -> vector<8x1xf32>
    %195 = vector.broadcast %194 : vector<8x1xf32> to vector<8x8xf32>
    %196 = arith.mulf %191, %195 : vector<8x8xf32>
    %197 = arith.truncf %196 : vector<8x8xf32> to vector<8x8xbf16>
    %cst_63 = arith.constant dense<0.000000e+00> : vector<8x16xf32>
    %198 = tpu.matmul %197, %182, %cst_63 {dimension_numbers = #tpu.dot_dimension_numbers<[1], [0], [0], [1], [0, 0, 1, 1], [], []>} : vector<8x8xbf16>, vector<8x16xbf16>, vector<8x16xf32> -> vector<8x16xf32>
    %c8_64 = arith.constant 8 : index
    %c48_65 = arith.constant 48 : index
    %199 = vector.load %arg14[%c8_64, %c48_65] : memref<32x64xf32, #tpu.memory_space<vmem>>, vector<8x16xf32>
    tpu.vector_store %arg14[%c8_64, %c48_65], %198 {strides = array<i32>} : memref<32x64xf32, #tpu.memory_space<vmem>>, vector<8x16xf32>,
    %200 = vector.extract_strided_slice %29 {offsets = [16, 0], sizes = [8, 16], strides = [1, 1]} : vector<32x64xbf16> to vector<8x16xbf16>
    %201 = vector.extract_strided_slice %31 {offsets = [16, 0], sizes = [8, 16], strides = [1, 1]} : vector<32x64xbf16> to vector<8x16xbf16>
    %202 = vector.extract_strided_slice %33 {offsets = [16, 0], sizes = [8, 16], strides = [1, 1]} : vector<32x64xbf16> to vector<8x16xbf16>
    %cst_66 = arith.constant dense<0.000000e+00> : vector<8x8xf32>
    %203 = tpu.matmul %200, %201, %cst_66 {dimension_numbers = #tpu.dot_dimension_numbers<[1], [1], [0], [0], [0, 0, 1, 0], [], []>} : vector<8x16xbf16>, vector<8x16xbf16>, vector<8x8xf32> -> vector<8x8xf32>
    %cst_67 = arith.constant 2.500000e-01 : f32
    %204 = vector.broadcast %cst_67 : f32 to vector<8x8xf32>
    %205 = arith.mulf %203, %204 : vector<8x8xf32>
    %206 = arith.addf %205, %39 : vector<8x8xf32>
    %cst_68 = arith.constant dense<0xFF800000> : vector<8xf32>
    %207 = vector.multi_reduction <maximumf>, %206, %cst_68 [1] : vector<8x8xf32> to vector<8xf32>
    %208 = vector.shape_cast %207 : vector<8xf32> to vector<8x1xf32>
    %209 = vector.broadcast %208 : vector<8x1xf32> to vector<8x8xf32>
    %210 = arith.subf %206, %209 : vector<8x8xf32>
    %211 = math.exp %210 : vector<8x8xf32>
    %cst_69 = arith.constant dense<0.000000e+00> : vector<8xf32>
    %212 = vector.multi_reduction <add>, %211, %cst_69 [1] : vector<8x8xf32> to vector<8xf32>
    %213 = vector.shape_cast %212 : vector<8xf32> to vector<8x1xf32>
    %214 = tpu.reciprocal %213 {approx = true} : vector<8x1xf32> -> vector<8x1xf32>
    %215 = vector.broadcast %214 : vector<8x1xf32> to vector<8x8xf32>
    %216 = arith.mulf %211, %215 : vector<8x8xf32>
    %217 = arith.truncf %216 : vector<8x8xf32> to vector<8x8xbf16>
    %cst_70 = arith.constant dense<0.000000e+00> : vector<8x16xf32>
    %218 = tpu.matmul %217, %202, %cst_70 {dimension_numbers = #tpu.dot_dimension_numbers<[1], [0], [0], [1], [0, 0, 1, 1], [], []>} : vector<8x8xbf16>, vector<8x16xbf16>, vector<8x16xf32> -> vector<8x16xf32>
    %c16_71 = arith.constant 16 : index
    %c0_72 = arith.constant 0 : index
    %219 = vector.load %arg14[%c16_71, %c0_72] : memref<32x64xf32, #tpu.memory_space<vmem>>, vector<8x16xf32>
    tpu.vector_store %arg14[%c16_71, %c0_72], %218 {strides = array<i32>} : memref<32x64xf32, #tpu.memory_space<vmem>>, vector<8x16xf32>,
    %220 = vector.extract_strided_slice %29 {offsets = [16, 16], sizes = [8, 16], strides = [1, 1]} : vector<32x64xbf16> to vector<8x16xbf16>
    %221 = vector.extract_strided_slice %31 {offsets = [16, 16], sizes = [8, 16], strides = [1, 1]} : vector<32x64xbf16> to vector<8x16xbf16>
    %222 = vector.extract_strided_slice %33 {offsets = [16, 16], sizes = [8, 16], strides = [1, 1]} : vector<32x64xbf16> to vector<8x16xbf16>
    %cst_73 = arith.constant dense<0.000000e+00> : vector<8x8xf32>
    %223 = tpu.matmul %220, %221, %cst_73 {dimension_numbers = #tpu.dot_dimension_numbers<[1], [1], [0], [0], [0, 0, 1, 0], [], []>} : vector<8x16xbf16>, vector<8x16xbf16>, vector<8x8xf32> -> vector<8x8xf32>
    %cst_74 = arith.constant 2.500000e-01 : f32
    %224 = vector.broadcast %cst_74 : f32 to vector<8x8xf32>
    %225 = arith.mulf %223, %224 : vector<8x8xf32>
    %226 = arith.addf %225, %39 : vector<8x8xf32>
    %cst_75 = arith.constant dense<0xFF800000> : vector<8xf32>
    %227 = vector.multi_reduction <maximumf>, %226, %cst_75 [1] : vector<8x8xf32> to vector<8xf32>
    %228 = vector.shape_cast %227 : vector<8xf32> to vector<8x1xf32>
    %229 = vector.broadcast %228 : vector<8x1xf32> to vector<8x8xf32>
    %230 = arith.subf %226, %229 : vector<8x8xf32>
    %231 = math.exp %230 : vector<8x8xf32>
    %cst_76 = arith.constant dense<0.000000e+00> : vector<8xf32>
    %232 = vector.multi_reduction <add>, %231, %cst_76 [1] : vector<8x8xf32> to vector<8xf32>
    %233 = vector.shape_cast %232 : vector<8xf32> to vector<8x1xf32>
    %234 = tpu.reciprocal %233 {approx = true} : vector<8x1xf32> -> vector<8x1xf32>
    %235 = vector.broadcast %234 : vector<8x1xf32> to vector<8x8xf32>
    %236 = arith.mulf %231, %235 : vector<8x8xf32>
    %237 = arith.truncf %236 : vector<8x8xf32> to vector<8x8xbf16>
    %cst_77 = arith.constant dense<0.000000e+00> : vector<8x16xf32>
    %238 = tpu.matmul %237, %222, %cst_77 {dimension_numbers = #tpu.dot_dimension_numbers<[1], [0], [0], [1], [0, 0, 1, 1], [], []>} : vector<8x8xbf16>, vector<8x16xbf16>, vector<8x16xf32> -> vector<8x16xf32>
    %c16_78 = arith.constant 16 : index
    %c16_79 = arith.constant 16 : index
    %239 = vector.load %arg14[%c16_78, %c16_79] : memref<32x64xf32, #tpu.memory_space<vmem>>, vector<8x16xf32>
    tpu.vector_store %arg14[%c16_78, %c16_79], %238 {strides = array<i32>} : memref<32x64xf32, #tpu.memory_space<vmem>>, vector<8x16xf32>,
    %240 = vector.extract_strided_slice %29 {offsets = [16, 32], sizes = [8, 16], strides = [1, 1]} : vector<32x64xbf16> to vector<8x16xbf16>
    %241 = vector.extract_strided_slice %31 {offsets = [16, 32], sizes = [8, 16], strides = [1, 1]} : vector<32x64xbf16> to vector<8x16xbf16>
    %242 = vector.extract_strided_slice %33 {offsets = [16, 32], sizes = [8, 16], strides = [1, 1]} : vector<32x64xbf16> to vector<8x16xbf16>
    %cst_80 = arith.constant dense<0.000000e+00> : vector<8x8xf32>
    %243 = tpu.matmul %240, %241, %cst_80 {dimension_numbers = #tpu.dot_dimension_numbers<[1], [1], [0], [0], [0, 0, 1, 0], [], []>} : vector<8x16xbf16>, vector<8x16xbf16>, vector<8x8xf32> -> vector<8x8xf32>
    %cst_81 = arith.constant 2.500000e-01 : f32
    %244 = vector.broadcast %cst_81 : f32 to vector<8x8xf32>
    %245 = arith.mulf %243, %244 : vector<8x8xf32>
    %246 = arith.addf %245, %39 : vector<8x8xf32>
    %cst_82 = arith.constant dense<0xFF800000> : vector<8xf32>
    %247 = vector.multi_reduction <maximumf>, %246, %cst_82 [1] : vector<8x8xf32> to vector<8xf32>
    %248 = vector.shape_cast %247 : vector<8xf32> to vector<8x1xf32>
    %249 = vector.broadcast %248 : vector<8x1xf32> to vector<8x8xf32>
    %250 = arith.subf %246, %249 : vector<8x8xf32>
    %251 = math.exp %250 : vector<8x8xf32>
    %cst_83 = arith.constant dense<0.000000e+00> : vector<8xf32>
    %252 = vector.multi_reduction <add>, %251, %cst_83 [1] : vector<8x8xf32> to vector<8xf32>
    %253 = vector.shape_cast %252 : vector<8xf32> to vector<8x1xf32>
    %254 = tpu.reciprocal %253 {approx = true} : vector<8x1xf32> -> vector<8x1xf32>
    %255 = vector.broadcast %254 : vector<8x1xf32> to vector<8x8xf32>
    %256 = arith.mulf %251, %255 : vector<8x8xf32>
    %257 = arith.truncf %256 : vector<8x8xf32> to vector<8x8xbf16>
    %cst_84 = arith.constant dense<0.000000e+00> : vector<8x16xf32>
    %258 = tpu.matmul %257, %242, %cst_84 {dimension_numbers = #tpu.dot_dimension_numbers<[1], [0], [0], [1], [0, 0, 1, 1], [], []>} : vector<8x8xbf16>, vector<8x16xbf16>, vector<8x16xf32> -> vector<8x16xf32>
    %c16_85 = arith.constant 16 : index
    %c32_86 = arith.constant 32 : index
    %259 = vector.load %arg14[%c16_85, %c32_86] : memref<32x64xf32, #tpu.memory_space<vmem>>, vector<8x16xf32>
    tpu.vector_store %arg14[%c16_85, %c32_86], %258 {strides = array<i32>} : memref<32x64xf32, #tpu.memory_space<vmem>>, vector<8x16xf32>,
    %260 = vector.extract_strided_slice %29 {offsets = [16, 48], sizes = [8, 16], strides = [1, 1]} : vector<32x64xbf16> to vector<8x16xbf16>
    %261 = vector.extract_strided_slice %31 {offsets = [16, 48], sizes = [8, 16], strides = [1, 1]} : vector<32x64xbf16> to vector<8x16xbf16>
    %262 = vector.extract_strided_slice %33 {offsets = [16, 48], sizes = [8, 16], strides = [1, 1]} : vector<32x64xbf16> to vector<8x16xbf16>
    %cst_87 = arith.constant dense<0.000000e+00> : vector<8x8xf32>
    %263 = tpu.matmul %260, %261, %cst_87 {dimension_numbers = #tpu.dot_dimension_numbers<[1], [1], [0], [0], [0, 0, 1, 0], [], []>} : vector<8x16xbf16>, vector<8x16xbf16>, vector<8x8xf32> -> vector<8x8xf32>
    %cst_88 = arith.constant 2.500000e-01 : f32
    %264 = vector.broadcast %cst_88 : f32 to vector<8x8xf32>
    %265 = arith.mulf %263, %264 : vector<8x8xf32>
    %266 = arith.addf %265, %39 : vector<8x8xf32>
    %cst_89 = arith.constant dense<0xFF800000> : vector<8xf32>
    %267 = vector.multi_reduction <maximumf>, %266, %cst_89 [1] : vector<8x8xf32> to vector<8xf32>
    %268 = vector.shape_cast %267 : vector<8xf32> to vector<8x1xf32>
    %269 = vector.broadcast %268 : vector<8x1xf32> to vector<8x8xf32>
    %270 = arith.subf %266, %269 : vector<8x8xf32>
    %271 = math.exp %270 : vector<8x8xf32>
    %cst_90 = arith.constant dense<0.000000e+00> : vector<8xf32>
    %272 = vector.multi_reduction <add>, %271, %cst_90 [1] : vector<8x8xf32> to vector<8xf32>
    %273 = vector.shape_cast %272 : vector<8xf32> to vector<8x1xf32>
    %274 = tpu.reciprocal %273 {approx = true} : vector<8x1xf32> -> vector<8x1xf32>
    %275 = vector.broadcast %274 : vector<8x1xf32> to vector<8x8xf32>
    %276 = arith.mulf %271, %275 : vector<8x8xf32>
    %277 = arith.truncf %276 : vector<8x8xf32> to vector<8x8xbf16>
    %cst_91 = arith.constant dense<0.000000e+00> : vector<8x16xf32>
    %278 = tpu.matmul %277, %262, %cst_91 {dimension_numbers = #tpu.dot_dimension_numbers<[1], [0], [0], [1], [0, 0, 1, 1], [], []>} : vector<8x8xbf16>, vector<8x16xbf16>, vector<8x16xf32> -> vector<8x16xf32>
    %c16_92 = arith.constant 16 : index
    %c48_93 = arith.constant 48 : index
    %279 = vector.load %arg14[%c16_92, %c48_93] : memref<32x64xf32, #tpu.memory_space<vmem>>, vector<8x16xf32>
    tpu.vector_store %arg14[%c16_92, %c48_93], %278 {strides = array<i32>} : memref<32x64xf32, #tpu.memory_space<vmem>>, vector<8x16xf32>,
    %280 = vector.extract_strided_slice %29 {offsets = [24, 0], sizes = [8, 16], strides = [1, 1]} : vector<32x64xbf16> to vector<8x16xbf16>
    %281 = vector.extract_strided_slice %31 {offsets = [24, 0], sizes = [8, 16], strides = [1, 1]} : vector<32x64xbf16> to vector<8x16xbf16>
    %282 = vector.extract_strided_slice %33 {offsets = [24, 0], sizes = [8, 16], strides = [1, 1]} : vector<32x64xbf16> to vector<8x16xbf16>
    %cst_94 = arith.constant dense<0.000000e+00> : vector<8x8xf32>
    %283 = tpu.matmul %280, %281, %cst_94 {dimension_numbers = #tpu.dot_dimension_numbers<[1], [1], [0], [0], [0, 0, 1, 0], [], []>} : vector<8x16xbf16>, vector<8x16xbf16>, vector<8x8xf32> -> vector<8x8xf32>
    %cst_95 = arith.constant 2.500000e-01 : f32
    %284 = vector.broadcast %cst_95 : f32 to vector<8x8xf32>
    %285 = arith.mulf %283, %284 : vector<8x8xf32>
    %286 = arith.addf %285, %39 : vector<8x8xf32>
    %cst_96 = arith.constant dense<0xFF800000> : vector<8xf32>
    %287 = vector.multi_reduction <maximumf>, %286, %cst_96 [1] : vector<8x8xf32> to vector<8xf32>
    %288 = vector.shape_cast %287 : vector<8xf32> to vector<8x1xf32>
    %289 = vector.broadcast %288 : vector<8x1xf32> to vector<8x8xf32>
    %290 = arith.subf %286, %289 : vector<8x8xf32>
    %291 = math.exp %290 : vector<8x8xf32>
    %cst_97 = arith.constant dense<0.000000e+00> : vector<8xf32>
    %292 = vector.multi_reduction <add>, %291, %cst_97 [1] : vector<8x8xf32> to vector<8xf32>
    %293 = vector.shape_cast %292 : vector<8xf32> to vector<8x1xf32>
    %294 = tpu.reciprocal %293 {approx = true} : vector<8x1xf32> -> vector<8x1xf32>
    %295 = vector.broadcast %294 : vector<8x1xf32> to vector<8x8xf32>
    %296 = arith.mulf %291, %295 : vector<8x8xf32>
    %297 = arith.truncf %296 : vector<8x8xf32> to vector<8x8xbf16>
    %cst_98 = arith.constant dense<0.000000e+00> : vector<8x16xf32>
    %298 = tpu.matmul %297, %282, %cst_98 {dimension_numbers = #tpu.dot_dimension_numbers<[1], [0], [0], [1], [0, 0, 1, 1], [], []>} : vector<8x8xbf16>, vector<8x16xbf16>, vector<8x16xf32> -> vector<8x16xf32>
    %c24 = arith.constant 24 : index
    %c0_99 = arith.constant 0 : index
    %299 = vector.load %arg14[%c24, %c0_99] : memref<32x64xf32, #tpu.memory_space<vmem>>, vector<8x16xf32>
    tpu.vector_store %arg14[%c24, %c0_99], %298 {strides = array<i32>} : memref<32x64xf32, #tpu.memory_space<vmem>>, vector<8x16xf32>,
    %300 = vector.extract_strided_slice %29 {offsets = [24, 16], sizes = [8, 16], strides = [1, 1]} : vector<32x64xbf16> to vector<8x16xbf16>
    %301 = vector.extract_strided_slice %31 {offsets = [24, 16], sizes = [8, 16], strides = [1, 1]} : vector<32x64xbf16> to vector<8x16xbf16>
    %302 = vector.extract_strided_slice %33 {offsets = [24, 16], sizes = [8, 16], strides = [1, 1]} : vector<32x64xbf16> to vector<8x16xbf16>
    %cst_100 = arith.constant dense<0.000000e+00> : vector<8x8xf32>
    %303 = tpu.matmul %300, %301, %cst_100 {dimension_numbers = #tpu.dot_dimension_numbers<[1], [1], [0], [0], [0, 0, 1, 0], [], []>} : vector<8x16xbf16>, vector<8x16xbf16>, vector<8x8xf32> -> vector<8x8xf32>
    %cst_101 = arith.constant 2.500000e-01 : f32
    %304 = vector.broadcast %cst_101 : f32 to vector<8x8xf32>
    %305 = arith.mulf %303, %304 : vector<8x8xf32>
    %306 = arith.addf %305, %39 : vector<8x8xf32>
    %cst_102 = arith.constant dense<0xFF800000> : vector<8xf32>
    %307 = vector.multi_reduction <maximumf>, %306, %cst_102 [1] : vector<8x8xf32> to vector<8xf32>
    %308 = vector.shape_cast %307 : vector<8xf32> to vector<8x1xf32>
    %309 = vector.broadcast %308 : vector<8x1xf32> to vector<8x8xf32>
    %310 = arith.subf %306, %309 : vector<8x8xf32>
    %311 = math.exp %310 : vector<8x8xf32>
    %cst_103 = arith.constant dense<0.000000e+00> : vector<8xf32>
    %312 = vector.multi_reduction <add>, %311, %cst_103 [1] : vector<8x8xf32> to vector<8xf32>
    %313 = vector.shape_cast %312 : vector<8xf32> to vector<8x1xf32>
    %314 = tpu.reciprocal %313 {approx = true} : vector<8x1xf32> -> vector<8x1xf32>
    %315 = vector.broadcast %314 : vector<8x1xf32> to vector<8x8xf32>
    %316 = arith.mulf %311, %315 : vector<8x8xf32>
    %317 = arith.truncf %316 : vector<8x8xf32> to vector<8x8xbf16>
    %cst_104 = arith.constant dense<0.000000e+00> : vector<8x16xf32>
    %318 = tpu.matmul %317, %302, %cst_104 {dimension_numbers = #tpu.dot_dimension_numbers<[1], [0], [0], [1], [0, 0, 1, 1], [], []>} : vector<8x8xbf16>, vector<8x16xbf16>, vector<8x16xf32> -> vector<8x16xf32>
    %c24_105 = arith.constant 24 : index
    %c16_106 = arith.constant 16 : index
    %319 = vector.load %arg14[%c24_105, %c16_106] : memref<32x64xf32, #tpu.memory_space<vmem>>, vector<8x16xf32>
    tpu.vector_store %arg14[%c24_105, %c16_106], %318 {strides = array<i32>} : memref<32x64xf32, #tpu.memory_space<vmem>>, vector<8x16xf32>,
    %320 = vector.extract_strided_slice %29 {offsets = [24, 32], sizes = [8, 16], strides = [1, 1]} : vector<32x64xbf16> to vector<8x16xbf16>
    %321 = vector.extract_strided_slice %31 {offsets = [24, 32], sizes = [8, 16], strides = [1, 1]} : vector<32x64xbf16> to vector<8x16xbf16>
    %322 = vector.extract_strided_slice %33 {offsets = [24, 32], sizes = [8, 16], strides = [1, 1]} : vector<32x64xbf16> to vector<8x16xbf16>
    %cst_107 = arith.constant dense<0.000000e+00> : vector<8x8xf32>
    %323 = tpu.matmul %320, %321, %cst_107 {dimension_numbers = #tpu.dot_dimension_numbers<[1], [1], [0], [0], [0, 0, 1, 0], [], []>} : vector<8x16xbf16>, vector<8x16xbf16>, vector<8x8xf32> -> vector<8x8xf32>
    %cst_108 = arith.constant 2.500000e-01 : f32
    %324 = vector.broadcast %cst_108 : f32 to vector<8x8xf32>
    %325 = arith.mulf %323, %324 : vector<8x8xf32>
    %326 = arith.addf %325, %39 : vector<8x8xf32>
    %cst_109 = arith.constant dense<0xFF800000> : vector<8xf32>
    %327 = vector.multi_reduction <maximumf>, %326, %cst_109 [1] : vector<8x8xf32> to vector<8xf32>
    %328 = vector.shape_cast %327 : vector<8xf32> to vector<8x1xf32>
    %329 = vector.broadcast %328 : vector<8x1xf32> to vector<8x8xf32>
    %330 = arith.subf %326, %329 : vector<8x8xf32>
    %331 = math.exp %330 : vector<8x8xf32>
    %cst_110 = arith.constant dense<0.000000e+00> : vector<8xf32>
    %332 = vector.multi_reduction <add>, %331, %cst_110 [1] : vector<8x8xf32> to vector<8xf32>
    %333 = vector.shape_cast %332 : vector<8xf32> to vector<8x1xf32>
    %334 = tpu.reciprocal %333 {approx = true} : vector<8x1xf32> -> vector<8x1xf32>
    %335 = vector.broadcast %334 : vector<8x1xf32> to vector<8x8xf32>
    %336 = arith.mulf %331, %335 : vector<8x8xf32>
    %337 = arith.truncf %336 : vector<8x8xf32> to vector<8x8xbf16>
    %cst_111 = arith.constant dense<0.000000e+00> : vector<8x16xf32>
    %338 = tpu.matmul %337, %322, %cst_111 {dimension_numbers = #tpu.dot_dimension_numbers<[1], [0], [0], [1], [0, 0, 1, 1], [], []>} : vector<8x8xbf16>, vector<8x16xbf16>, vector<8x16xf32> -> vector<8x16xf32>
    %c24_112 = arith.constant 24 : index
    %c32_113 = arith.constant 32 : index
    %339 = vector.load %arg14[%c24_112, %c32_113] : memref<32x64xf32, #tpu.memory_space<vmem>>, vector<8x16xf32>
    tpu.vector_store %arg14[%c24_112, %c32_113], %338 {strides = array<i32>} : memref<32x64xf32, #tpu.memory_space<vmem>>, vector<8x16xf32>,
    %340 = vector.extract_strided_slice %29 {offsets = [24, 48], sizes = [8, 16], strides = [1, 1]} : vector<32x64xbf16> to vector<8x16xbf16>
    %341 = vector.extract_strided_slice %31 {offsets = [24, 48], sizes = [8, 16], strides = [1, 1]} : vector<32x64xbf16> to vector<8x16xbf16>
    %342 = vector.extract_strided_slice %33 {offsets = [24, 48], sizes = [8, 16], strides = [1, 1]} : vector<32x64xbf16> to vector<8x16xbf16>
    %cst_114 = arith.constant dense<0.000000e+00> : vector<8x8xf32>
    %343 = tpu.matmul %340, %341, %cst_114 {dimension_numbers = #tpu.dot_dimension_numbers<[1], [1], [0], [0], [0, 0, 1, 0], [], []>} : vector<8x16xbf16>, vector<8x16xbf16>, vector<8x8xf32> -> vector<8x8xf32>
    %cst_115 = arith.constant 2.500000e-01 : f32
    %344 = vector.broadcast %cst_115 : f32 to vector<8x8xf32>
    %345 = arith.mulf %343, %344 : vector<8x8xf32>
    %346 = arith.addf %345, %39 : vector<8x8xf32>
    %cst_116 = arith.constant dense<0xFF800000> : vector<8xf32>
    %347 = vector.multi_reduction <maximumf>, %346, %cst_116 [1] : vector<8x8xf32> to vector<8xf32>
    %348 = vector.shape_cast %347 : vector<8xf32> to vector<8x1xf32>
    %349 = vector.broadcast %348 : vector<8x1xf32> to vector<8x8xf32>
    %350 = arith.subf %346, %349 : vector<8x8xf32>
    %351 = math.exp %350 : vector<8x8xf32>
    %cst_117 = arith.constant dense<0.000000e+00> : vector<8xf32>
    %352 = vector.multi_reduction <add>, %351, %cst_117 [1] : vector<8x8xf32> to vector<8xf32>
    %353 = vector.shape_cast %352 : vector<8xf32> to vector<8x1xf32>
    %354 = tpu.reciprocal %353 {approx = true} : vector<8x1xf32> -> vector<8x1xf32>
    %355 = vector.broadcast %354 : vector<8x1xf32> to vector<8x8xf32>
    %356 = arith.mulf %351, %355 : vector<8x8xf32>
    %357 = arith.truncf %356 : vector<8x8xf32> to vector<8x8xbf16>
    %cst_118 = arith.constant dense<0.000000e+00> : vector<8x16xf32>
    %358 = tpu.matmul %357, %342, %cst_118 {dimension_numbers = #tpu.dot_dimension_numbers<[1], [0], [0], [1], [0, 0, 1, 1], [], []>} : vector<8x8xbf16>, vector<8x16xbf16>, vector<8x16xf32> -> vector<8x16xf32>
    %c24_119 = arith.constant 24 : index
    %c48_120 = arith.constant 48 : index
    %359 = vector.load %arg14[%c24_119, %c48_120] : memref<32x64xf32, #tpu.memory_space<vmem>>, vector<8x16xf32>
    tpu.vector_store %arg14[%c24_119, %c48_120], %358 {strides = array<i32>} : memref<32x64xf32, #tpu.memory_space<vmem>>, vector<8x16xf32>,
    %c0_121 = arith.constant 0 : index
    %c0_122 = arith.constant 0 : index
    %360 = vector.load %arg14[%c0_121, %c0_122] : memref<32x64xf32, #tpu.memory_space<vmem>>, vector<32x64xf32>
    %361 = arith.truncf %360 : vector<32x64xf32> to vector<32x64xbf16>
    %c0_123 = arith.constant 0 : index
    %c0_124 = arith.constant 0 : index
    %362 = vector.load %arg3[%c0_123, %c0_124] : memref<64x64xbf16, #tpu.memory_space<vmem>>, vector<64x64xbf16>
    %cst_125 = arith.constant dense<0.000000e+00> : vector<32x64xf32>
    %363 = tpu.matmul %361, %362, %cst_125 {dimension_numbers = #tpu.dot_dimension_numbers<[1], [0], [0], [1], [0, 0, 1, 1], [], []>} : vector<32x64xbf16>, vector<64x64xbf16>, vector<32x64xf32> -> vector<32x64xf32>
    %c0_126 = arith.constant 0 : index
    %c0_127 = arith.constant 0 : index
    %364 = vector.load %arg4[%c0_126, %c0_127] : memref<1x64xf32, #tpu.memory_space<vmem>>, vector<1x64xf32>
    %365 = vector.broadcast %364 : vector<1x64xf32> to vector<32x64xf32>
    %366 = arith.addf %363, %365 : vector<32x64xf32>
    %367 = arith.addf %0, %366 : vector<32x64xf32>
    %cst_128 = arith.constant dense<0.000000e+00> : vector<32xf32>
    %368 = vector.multi_reduction <add>, %367, %cst_128 [1] : vector<32x64xf32> to vector<32xf32>
    %369 = vector.shape_cast %368 : vector<32xf32> to vector<32x1xf32>
    %cst_129 = arith.constant 6.400000e+01 : f32
    %370 = vector.broadcast %cst_129 : f32 to vector<32x1xf32>
    %371 = arith.divf %369, %370 : vector<32x1xf32>
    %372 = vector.broadcast %371 : vector<32x1xf32> to vector<32x64xf32>
    %373 = arith.subf %367, %372 : vector<32x64xf32>
    %374 = arith.mulf %373, %373 : vector<32x64xf32>
    %cst_130 = arith.constant dense<0.000000e+00> : vector<32xf32>
    %375 = vector.multi_reduction <add>, %374, %cst_130 [1] : vector<32x64xf32> to vector<32xf32>
    %376 = vector.shape_cast %375 : vector<32xf32> to vector<32x1xf32>
    %cst_131 = arith.constant 6.400000e+01 : f32
    %377 = vector.broadcast %cst_131 : f32 to vector<32x1xf32>
    %378 = arith.divf %376, %377 : vector<32x1xf32>
    %379 = vector.broadcast %371 : vector<32x1xf32> to vector<32x64xf32>
    %380 = arith.subf %367, %379 : vector<32x64xf32>
    %cst_132 = arith.constant 9.99999974E-6 : f32
    %381 = vector.broadcast %cst_132 : f32 to vector<32x1xf32>
    %382 = arith.addf %378, %381 : vector<32x1xf32>
    %383 = math.rsqrt %382 : vector<32x1xf32>
    %384 = vector.broadcast %383 : vector<32x1xf32> to vector<32x64xf32>
    %385 = arith.mulf %380, %384 : vector<32x64xf32>
    %c0_133 = arith.constant 0 : index
    %c0_134 = arith.constant 0 : index
    %386 = vector.load %arg7[%c0_133, %c0_134] : memref<1x64xf32, #tpu.memory_space<vmem>>, vector<1x64xf32>
    %387 = vector.broadcast %386 : vector<1x64xf32> to vector<32x64xf32>
    %388 = arith.mulf %385, %387 : vector<32x64xf32>
    %c0_135 = arith.constant 0 : index
    %c0_136 = arith.constant 0 : index
    %389 = vector.load %arg8[%c0_135, %c0_136] : memref<1x64xf32, #tpu.memory_space<vmem>>, vector<1x64xf32>
    %390 = vector.broadcast %389 : vector<1x64xf32> to vector<32x64xf32>
    %391 = arith.addf %388, %390 : vector<32x64xf32>
    %392 = arith.truncf %391 : vector<32x64xf32> to vector<32x64xbf16>
    %c0_137 = arith.constant 0 : index
    %c0_138 = arith.constant 0 : index
    %393 = vector.load %arg9[%c0_137, %c0_138] : memref<64x256xbf16, #tpu.memory_space<vmem>>, vector<64x256xbf16>
    %cst_139 = arith.constant dense<0.000000e+00> : vector<32x256xf32>
    %394 = tpu.matmul %392, %393, %cst_139 {dimension_numbers = #tpu.dot_dimension_numbers<[1], [0], [0], [1], [0, 0, 1, 1], [], []>} : vector<32x64xbf16>, vector<64x256xbf16>, vector<32x256xf32> -> vector<32x256xf32>
    %c0_140 = arith.constant 0 : index
    %c0_141 = arith.constant 0 : index
    %395 = vector.load %arg10[%c0_140, %c0_141] : memref<1x256xf32, #tpu.memory_space<vmem>>, vector<1x256xf32>
    %396 = vector.broadcast %395 : vector<1x256xf32> to vector<32x256xf32>
    %397 = arith.addf %394, %396 : vector<32x256xf32>
    %cst_142 = arith.constant 0.000000e+00 : f32
    %398 = vector.broadcast %cst_142 : f32 to vector<32x256xf32>
    %399 = arith.maximumf %397, %398 : vector<32x256xf32>
    %400 = arith.truncf %399 : vector<32x256xf32> to vector<32x256xbf16>
    %c0_143 = arith.constant 0 : index
    %c0_144 = arith.constant 0 : index
    %401 = vector.load %arg11[%c0_143, %c0_144] : memref<256x64xbf16, #tpu.memory_space<vmem>>, vector<256x64xbf16>
    %cst_145 = arith.constant dense<0.000000e+00> : vector<32x64xf32>
    %402 = tpu.matmul %400, %401, %cst_145 {dimension_numbers = #tpu.dot_dimension_numbers<[1], [0], [0], [1], [0, 0, 1, 1], [], []>} : vector<32x256xbf16>, vector<256x64xbf16>, vector<32x64xf32> -> vector<32x64xf32>
    %c0_146 = arith.constant 0 : index
    %c0_147 = arith.constant 0 : index
    %403 = vector.load %arg12[%c0_146, %c0_147] : memref<1x64xf32, #tpu.memory_space<vmem>>, vector<1x64xf32>
    %404 = vector.broadcast %403 : vector<1x64xf32> to vector<32x64xf32>
    %405 = arith.addf %402, %404 : vector<32x64xf32>
    %406 = arith.addf %367, %405 : vector<32x64xf32>
    %c0_148 = arith.constant 0 : index
    %c0_149 = arith.constant 0 : index
    %407 = vector.load %arg13[%c0_148, %c0_149] : memref<32x64xf32, #tpu.memory_space<vmem>>, vector<32x64xf32>
    tpu.vector_store %arg13[%c0_148, %c0_149], %406 {strides = array<i32>} : memref<32x64xf32, #tpu.memory_space<vmem>>, vector<32x64xf32>,
    return
  }
  func.func @transform_0(%arg0: i32) -> (i32, i32) {
    %c0_i32 = arith.constant 0 : i32
    %c0_i32_0 = arith.constant 0 : i32
    return %arg0, %c0_i32 : i32, i32
  }
  func.func @transform_1(%arg0: i32) -> (i32, i32) {
    %c0_i32 = arith.constant 0 : i32
    %c0_i32_0 = arith.constant 0 : i32
    %c0_i32_1 = arith.constant 0 : i32
    return %c0_i32, %c0_i32_0 : i32, i32
  }
  func.func @transform_2(%arg0: i32) -> (i32, i32) {
    %c0_i32 = arith.constant 0 : i32
    %c0_i32_0 = arith.constant 0 : i32
    %c0_i32_1 = arith.constant 0 : i32
    return %c0_i32, %c0_i32_0 : i32, i32
  }
  func.func @transform_3(%arg0: i32) -> (i32, i32) {
    %c0_i32 = arith.constant 0 : i32
    %c0_i32_0 = arith.constant 0 : i32
    %c0_i32_1 = arith.constant 0 : i32
    return %c0_i32, %c0_i32_0 : i32, i32
  }
  func.func @transform_4(%arg0: i32) -> (i32, i32) {
    %c0_i32 = arith.constant 0 : i32
    %c0_i32_0 = arith.constant 0 : i32
    %c0_i32_1 = arith.constant 0 : i32
    return %c0_i32, %c0_i32_0 : i32, i32
  }
  func.func @transform_5(%arg0: i32) -> (i32, i32) {
    %c0_i32 = arith.constant 0 : i32
    %c0_i32_0 = arith.constant 0 : i32
    %c0_i32_1 = arith.constant 0 : i32
    return %c0_i32, %c0_i32_0 : i32, i32
  }
  func.func @transform_6(%arg0: i32) -> (i32, i32) {
    %c0_i32 = arith.constant 0 : i32
    %c0_i32_0 = arith.constant 0 : i32
    %c0_i32_1 = arith.constant 0 : i32
    return %c0_i32, %c0_i32_0 : i32, i32
  }
  func.func @transform_7(%arg0: i32) -> (i32, i32) {
    %c0_i32 = arith.constant 0 : i32
    %c0_i32_0 = arith.constant 0 : i32
    %c0_i32_1 = arith.constant 0 : i32
    return %c0_i32, %c0_i32_0 : i32, i32
  }
  func.func @transform_8(%arg0: i32) -> (i32, i32) {
    %c0_i32 = arith.constant 0 : i32
    %c0_i32_0 = arith.constant 0 : i32
    %c0_i32_1 = arith.constant 0 : i32
    return %c0_i32, %c0_i32_0 : i32, i32
  }
  func.func @transform_9(%arg0: i32) -> (i32, i32) {
    %c0_i32 = arith.constant 0 : i32
    %c0_i32_0 = arith.constant 0 : i32
    %c0_i32_1 = arith.constant 0 : i32
    return %c0_i32, %c0_i32_0 : i32, i32
  }
  func.func @transform_10(%arg0: i32) -> (i32, i32) {
    %c0_i32 = arith.constant 0 : i32
    %c0_i32_0 = arith.constant 0 : i32
    %c0_i32_1 = arith.constant 0 : i32
    return %c0_i32, %c0_i32_0 : i32, i32
  }
  func.func @transform_11(%arg0: i32) -> (i32, i32) {
    %c0_i32 = arith.constant 0 : i32
    %c0_i32_0 = arith.constant 0 : i32
    %c0_i32_1 = arith.constant 0 : i32
    return %c0_i32, %c0_i32_0 : i32, i32
  }
  func.func @transform_12(%arg0: i32) -> (i32, i32) {
    %c0_i32 = arith.constant 0 : i32
    %c0_i32_0 = arith.constant 0 : i32
    return %arg0, %c0_i32 : i32, i32
  }
}

</mosaic_0001>

<bundles_post_ra>
// kernel: tpu_custom_call.1
= control target key start
LH: loop header
LB: loop body
LE: loop exit
PB: predicated region body
PF: predicated region fallthrough
CT: control target
= control target key end

     0   :  { %17 = vsyncpa [#allocation4], 0  ;;  %s4667_s0 = inlined_call_operand.vmem [shape: f32[64,64], index: 0, kind: input, shape index: {}]   ;;  %s4668_s1 = inlined_call_operand.vmem [shape: bf16[64,192], index: 1, kind: input, shape index: {}]   ;;  %s4669_s2 = inlined_call_operand.hbm [shape: bf16[64,64], index: 2, kind: input, shape index: {}]   ;;  %s4670_s3 = inlined_call_operand.vmem [shape: f32[1,64], index: 3, kind: input, shape index: {}]   ;;  %s4671_s4 = inlined_call_operand.vmem [shape: f32[1,64], index: 4, kind: input, shape index: {}]   ;;  %s4672_s5 = inlined_call_operand.vmem [shape: f32[1,64], index: 5, kind: input, shape index: {}]   ;;  %s4673_s6 = inlined_call_operand.vmem [shape: f32[1,64], index: 6, kind: input, shape index: {}]   ;;  %s4674_s7 = inlined_call_operand.vmem [shape: f32[1,64], index: 7, kind: input, shape index: {}]   ;;  %s4675_s8 = inlined_call_operand.vmem [shape: bf16[64,256], index: 8, kind: input, shape index: {}]   ;;  %s4676_s9 = inlined_call_operand.vmem [shape: f32[1,256], index: 9, kind: input, shape index: {}]   ;;  %s4677_s10 = inlined_call_operand.vmem [shape: bf16[256,64], index: 10, kind: input, shape index: {}]   ;;  %s4678_s11 = inlined_call_operand.vmem [shape: f32[1,64], index: 11, kind: input, shape index: {}]   ;;  %s4679_s12 = inlined_call_operand.hbm [shape: f32[64,64], index: 12, kind: output, shape index: {}]  }
   0x1   :  { %18 = vsyncpa [#allocation5], 0 }
   0x2   :  { %20 = vsyncpa [#allocation5 + $0x1], 0  ;;  %s3843_s21 = smov 0   ;;  %s3845_s22 = smov 0  }
   0x3   :  { %s3847_s23 = smov 0   ;;  %s3849_s24 = smov 0  }
   0x4 LB: > { %4684 = sst [smem:[#allocation9_spill]] %s3755_s23  ;;  %s3864_s25 = sadd.s32 4294967295, %s3759_s24   ;;  %s3759_s24 = sphi %s3849_s24, %s4699_s24   ;;  %s3755_s23 = sphi %s3847_s23, %s4696_s23   ;;  %s3751_s22 = sphi %s3845_s22, %s4698_s22   ;;  %s3747_s21 = sphi %s3843_s21, %s4697_s21  }
   0x5   : > { %s3075_s26 = sadd.s32 4294967294, %s3759_s24   ;;  %s3868_s27 = sadd.s32 1, %s3759_s24  }
   0x6   : > { %s290_s28 = sadd.s32 1, %s3755_s23  ;;  %s287_s29 = ssub.s32 %s3759_s24, %s3868_s27 }
   0x7   : > { %p300_p0 = scmp.ne.s32.totalorder %s3755_s23, %s3751_s22  ;;  %p288_p1 = scmp.eq.s32.totalorder %s287_s29, 0 }
   0x8   : > { %p301_p2 = scmp.eq.s32.totalorder %s3864_s25, 1  ;;  %p306_p3 = scmp.ne.s32.totalorder %s3751_s22, %s3747_s21 }
   0x9   : > { %p307_p4 = scmp.eq.s32.totalorder %s3075_s26, 1  ;;  %p3076_p7 = scmp.ge.s32.totalorder %s3759_s24, 1 }
   0xa   : > { %s3879_s30 = scalar_select %p288_p1, %s3755_s23, %s290_s28  }
   0xb   : > { %p3881_p5 = por %p301_p2, %p300_p0  ;;  %p3885_p6 = por %p307_p4, %p306_p3 }
   0xc   : > { %4685 = sst [smem:[#allocation10_spill]] %s3879_s30  ;;  %p314_p8 = scmp.lt.s32.totalorder %s3759_s24, 3 }
   0xd   : > { %s4686_s13 = scalar_select %p3881_p5, 1, 0 }
   0xe   : > { %s4687_s14 = scalar_select %p3885_p6, 1, 0 }
   0xf   : > { %p4681_p9 = scmp.eq.s32.totalorder %s3864_s25, 0  ;;  %p3892_p10 = pnand %p3076_p7, %p314_p8 }
  0x10   : > { %s3761_s16 = smov [#allocation3]   ;;  %s3665_s26 = scalar_lea.hbm %s4669_s2, 512 }
  0x11   : > { %s4688_s15 = scalar_select %p3892_p10, 1, 0 }
  0x12   : > { %s329_s17 = sshll.u32 %s3761_s16, 4  ;;  %p3478_p11 = pneg %p3892_p10  ;;  %s330_s17 = int_to_ptr.vmem [resolvable:$true] %s329_s17 }
  0x13   : > { %p3666_p13 = scmp.ne.s32.totalorder %s4669_s2, %s3665_s26  ;;  %p3672_p3 = scmp.lt.u32.totalorder %s3665_s26, %s4669_s2 }
  0x14   : > { %p3900_p12 = pnand %p4681_p9, %p3478_p11 }
  0x16   : > { %p3667_p0 = pneg %p3900_p12 }
  0x18   : > { %p3668_p1 = pnand %p3667_p0, %p3666_p13 }
  0x1a   : > { %p3669_p2 = pneg %p3668_p1 }
  0x1c   : > { %p3674_p4 = pnand %p3672_p3, %p3669_p2 }
  0x1e   : > { %3677 = shalt.err (!%p3674_p4)
}
  0x1f   : > { %s3678_s23 = scalar_lea.vmem %s330_s17, 512  ;;  %p3686_p9 = scmp.lt.s32.totalorder %s330_s17, %s330_s17 }
  0x20   : > { %p3679_p7 = scmp.ne.s32.totalorder %s330_s17, %s3678_s23  ;;  %p3687_p6 = scmp.lt.s32.totalorder %s3678_s23, %s3678_s23 }
  0x22   : > { %p3681_p8 = pnand %p3679_p7, %p3667_p0  ;;  %p3688_p5 = por %p3687_p6, %p3686_p9 }
  0x24   : > { %p3682_p11 = pneg %p3681_p8 }
  0x26   : > { %p3689_p10 = pnand %p3688_p5, %p3682_p11 }
  0x28   : > { %3692 = shalt.err (!%p3689_p10)
}
  0x29   : > { %s3762_s19 = smov 64   ;;  %s3763_s20 = smov 4  }
  0x2a   : > { %3481 = dma.hbm_to_vmem [thread:$0]  (!%p3900_p12), %s4669_s2, 512, %s330_s17, [#allocation4], %s3762_s19, %s3762_s19, %s3763_s20  }
  0x2b   : > { %p4690_p13 = scmp.ne.s32.totalorder %s4688_s15, 0 }
  0x2c   : > { %p4691_p1 = scmp.eq.s32.totalorder (!%p4690_p13), %s3864_s25, 0 }
  0x2d   : > { %381 = sbr.rel (%p4690_p13) target bundleno = 3321 (0xcf9), region = 68 }
  0x34   : > { %3738 = dma.done.wait (%p4691_p1), [#allocation4], 512   ;;  %p4692_p0 = pmov %p4691_p1 }
  0x35   : > { %s3082_s23 = sshll.u32 %s3864_s25, 2  ;;  %vm435_vm0 = vcmask 523264   ;;  %v3537_v20 = vld [vmem:[%s4668_s1 + $0x4] ss:$8 sps:$4 sm:$0xff]   ;;  %v3539_v22 = vld [vmem:[%s4668_s1] ss:$8 sps:$4 sm:$0xff]  }
  0x36   : > { %3740 = vsyncadd (%p4692_p0), [#allocation4], 4294966784  ;;  %p424_p5 = scmp.lt.s32.totalorder %s3082_s23, 7  ;;  %567 = vmatprep.subr.bf16.mxu0 %v3537_v20  ;;  %v3540_v24 = vld [vmem:[%s4668_s1 + $0x14] ss:$8 sps:$4 sm:$0xff]   ;;  %v3764_v31 = vmov 0  }
  0x37   : > { %568 = vmatpush1.bf16.msra.mxu0 %v3539_v22  ;;  %v3542_v26 = vld [vmem:[%s4668_s1 + $0x10] ss:$8 sps:$4 sm:$0xff]   ;;  %v3543_v27 = vld [vmem:[%s4668_s1 + $0x24] ss:$8 sps:$4 sm:$0xff]   ;;  %v3545_v28 = vld [vmem:[%s4668_s1 + $0x20] ss:$8 sps:$4 sm:$0xff]   ;;  %599 = vmatprep.mubr.bf16.mxu0 %v3764_v31 }
  0x38   : > { %s4701_s23 = smov (!%p424_p5, %s3082_s23), 7  ;;  %569 = vmatprep.subr.bf16.mxu0 %v3540_v24  ;;  %v3546_v29 = vld [vmem:[%s4668_s1 + $0x34] ss:$8 sps:$4 sm:$0xff]   ;;  %v3548_v30 = vld [vmem:[%s4668_s1 + $0x30] ss:$8 sps:$4 sm:$0xff]   ;;  %v3765_v54 = vmov 0.0  }
  0x39   : > { %s3083_s30 = sshll.u32 %s4701_s23, 3  ;;  %v3084_v45 = vld [vmem:[%s4671_s4] ss:$0 sm:$0xff]  ;;  %3274 = vmatprep.subr.bf16.mxu1 %v3765_v54  ;;  %vm3766_vm1 = vmmov 0   ;;  %vm698_vm2 = vcmask 1043456   ;;  %s3767_s15 = smov 64  }
  0x3a   : > { %s3930_s16 = scalar_lea.vmem %s4667_s0, %s3083_s30  ;;  %v3085_v49 = vld [vmem:[%s4672_s5] ss:$0 sm:$0xff]  ;;  %3276 = vmatprep.mubr.msk.bf16.mxu1 %vm3766_vm1, %v3765_v54  ;;  %s3768_s17 = smov 112   ;;  %vm633_vm3 = vcmask 130048   ;;  %vm682_vm5 = vcmask 64512   ;;  %vm860_vm6 = vcmask 261248  }
  0x3b   : > { %v431_v0 = vld [vmem:[%s3930_s16] sm:$0xff]  ;;  %v432_v1 = vld [vmem:[%s3930_s16 + $0x8] sm:$0xff]  ;;  %v433_v4 = vld [vmem:[%s3930_s16 + $0x10] sm:$0xff]  ;;  %570 = vmatpush1.bf16.msra.mxu0 %v3542_v26  ;;  %s3769_s19 = smov 96   ;;  %s3770_s20 = smov 80   ;;  %vm978_vm7 = vcmask 392448  }
  0x3c   : > { %v436_v2 = vsel %vm435_vm0, %v431_v0, 0.0  ;;  %v439_v3 = vsel %vm435_vm0, %v432_v1, 0.0  ;;  %v442_v5 = vsel %vm435_vm0, %v433_v4, 0.0  ;;  %v434_v15 = vld [vmem:[%s3930_s16 + $0x18] sm:$0xff]  ;;  %571 = vmatprep.subr.bf16.mxu0 %v3543_v27  ;;  %s3771_s28 = smov 48   ;;  %s3772_s29 = smov 32  }
  0x3d   : > { %437 = vadd.xlane.f32.xlu0 %v436_v2  ;;  %v445_v17 = vsel %vm435_vm0, %v434_v15, 0.0  ;;  %s3773_s23 = smov 16   ;;  %v3774_v27 = vmov -1e+30   ;;  %vm1096_vm8 = vcmask 523648   ;;  %s420_s18 = sand.u32 1, %s3751_s22  }
  0x3e   : > { %p4693_p9 = scmp.ne.s32.totalorder %s4686_s13, 0 }
  0x3f   : > { %572 = vmatpush1.bf16.msra.mxu0 %v3545_v28 }
  0x40   : > { %573 = vmatprep.subr.bf16.mxu0 %v3546_v29 }
  0x41   : > { %440 = vadd.xlane.f32.xlu0 %v439_v3 }
  0x43   : > { %574 = vmatpush1.bf16.msra.mxu0 %v3548_v30 }
  0x44   : > { %3268 = vmatprep.subr.bf16.mxu0 %v3765_v54 }
  0x45   : > { %443 = vadd.xlane.f32.xlu0 %v442_v5 }
  0xca   : > { %v438_v6 = vpop.xlane.xlu0 %437 }
  0xcb   : > { %v449_v7 = vmul.f32 0.015625, %v438_v6 }
  0xcd   : > { %v453_v8 = vsub.f32 %v431_v0, %v449_v7 }
  0xce   : > { %v441_v9 = vpop.xlane.xlu0 %440 }
  0xcf   : > { %v450_v10 = vmul.f32 0.015625, %v441_v9  ;;  %v457_v11 = vmul.f32 %v453_v8, %v453_v8 }
  0xd1   : > { %v454_v12 = vsub.f32 %v432_v1, %v450_v10  ;;  %v461_v13 = vsel %vm435_vm0, %v457_v11, 0.0 }
  0xd2   : > { %462 = vadd.xlane.f32.xlu1 %v461_v13  ;;  %v444_v18 = vpop.xlane.xlu0 %443 }
  0xd3   : > { %v458_v14 = vmul.f32 %v454_v12, %v454_v12  ;;  %v451_v19 = vmul.f32 0.015625, %v444_v18 }
  0xd5   : > { %v464_v16 = vsel %vm435_vm0, %v458_v14, 0.0  ;;  %v455_v21 = vsub.f32 %v433_v4, %v451_v19 }
  0xd6   : > { %465 = vadd.xlane.f32.xlu1 %v464_v16 }
  0xd7   : > { %v459_v23 = vmul.f32 %v455_v21, %v455_v21 }
  0xd9   : > { %v467_v25 = vsel %vm435_vm0, %v459_v23, 0.0  ;;  %v624_v23 = vlaneseq }
  0xda   : > { %446 = vadd.xlane.f32.xlu1 %v445_v17  ;;  %468 = vadd.xlane.f32.xlu0 %v467_v25 }
  0xdb   : > { %v4039_v24 = vshrl.u32 %v624_v23, 7  ;;  %v627_v25 = vand.u32 127, %v624_v23 }
  0xdd   : > { %vm628_vm4 = vcmp.ge.s32.totalorder %v4039_v24, %v627_v25 }
  0xde   : > { %v4042_v28 = vsel %vm628_vm4, 0.0, %v3774_v27 }
 0x15f   : > { %v463_v32 = vpop.xlane.xlu1 %462 }
 0x160   : > { %v473_v33 = vmul.f32 0.015625, %v463_v32 }
 0x162   : > { %v477_v34 = vadd.f32 1e-05, %v473_v33 }
 0x163   : > { %v466_v35 = vpop.xlane.xlu1 %465 }
 0x164   : > { %3581 = vrsqrt.f32 %v477_v34  ;;  %v474_v36 = vmul.f32 0.015625, %v466_v35 }
 0x166   : > { %v478_v37 = vadd.f32 1e-05, %v474_v36 }
 0x167   : > { %v447_v38 = vpop.xlane.xlu1 %446  ;;  %v469_v55 = vpop.xlane.xlu0 %468 }
 0x168   : > { %3583 = vrsqrt.f32 %v478_v37  ;;  %v452_v39 = vmul.f32 0.015625, %v447_v38  ;;  %v475_v56 = vmul.f32 0.015625, %v469_v55 }
 0x16a   : > { %v456_v40 = vsub.f32 %v434_v15, %v452_v39  ;;  %v479_v57 = vadd.f32 1e-05, %v475_v56 }
 0x16c   : > { %v460_v41 = vmul.f32 %v456_v40, %v456_v40  ;;  %3585 = vrsqrt.f32 %v479_v57 }
 0x16e   : > { %v3582_v42 = vpop.eup %3581  ;;  %v470_v43 = vsel %vm435_vm0, %v460_v41, 0.0 }
 0x16f   : > { %471 = vadd.xlane.f32.xlu1 %v470_v43  ;;  %v485_v44 = vmul.f32 %v3582_v42, %v453_v8 }
 0x171   : > { %v496_v48 = vmul.f32 %v3084_v45, %v485_v44 }
 0x172   : > { %v3584_v46 = vpop.eup %3583 }
 0x173   : > { %v486_v47 = vmul.f32 %v3584_v46, %v454_v12  ;;  %v507_v51 = vadd.f32 %v3085_v49, %v496_v48 }
 0x175   : > { %v497_v50 = vmul.f32 %v3084_v45, %v486_v47 }
 0x176   : > { %v3586_v61 = vpop.eup %3585 }
 0x177   : > { %v508_v52 = vadd.f32 %v3085_v49, %v497_v50  ;;  %v487_v62 = vmul.f32 %v3586_v61, %v455_v21 }
 0x179   : > { %v511_v53 = vpack.c.bf16 %v508_v52, %v507_v51  ;;  %v498_v63 = vmul.f32 %v3084_v45, %v487_v62 }
 0x17b   : > { %3094 = vmatmul.mubr.msk.bf16.vlgmr.msra.gmra.mrb[0].mxu0 %vm435_vm0, %v511_v53  ;;  %v509_v3 = vadd.f32 %v3085_v49, %v498_v63 }
 0x17c   : > { %609 = vmatprep.mubr.bf16.mxu0 %v3764_v31 }
 0x1fc   : > { %v472_v58 = vpop.xlane.xlu1 %471 }
 0x1fd   : > { %v476_v59 = vmul.f32 0.015625, %v472_v58 }
 0x1ff   : > { %v480_v60 = vadd.f32 1e-05, %v476_v59 }
 0x201   : > { %3587 = vrsqrt.f32 %v480_v60 }
 0x20b   : > { %v3588_v0 = vpop.eup %3587 }
 0x20c   : > { %v488_v1 = vmul.f32 %v3588_v0, %v456_v40 }
 0x20e   : > { %v499_v2 = vmul.f32 %v3084_v45, %v488_v1 }
 0x210   : > { %v510_v4 = vadd.f32 %v3085_v49, %v499_v2 }
 0x212   : > { %v512_v5 = vpack.c.bf16 %v510_v4, %v509_v3 }
 0x214   : > { %3095 = vmatmul.mubr.msk.bf16.gmra.mrb[4].mxu0 %vm435_vm0, %v512_v5 }
 0x215   : > { %3270 = vmatprep.mubr.msk.bf16.mxu0 %vm3766_vm1, %v3765_v54 }
 0x24e   : > { %v601_v6 = vpop.f32.mrb[0].mxu0 }
 0x24f   : > { %v603_v7 = vpop.f32.mrb[1].mxu0 }
 0x250   : > { %v605_v8 = vpop.f32.mrb[2].mxu0 }
 0x251   : > { %v3984_v9 = vpack.c.bf16 %v605_v8, %v601_v6  ;;  %v607_v10 = vpop.f32.mrb[3].mxu0 }
 0x252   : > { %v3986_v11 = vpack.c.bf16 %v607_v10, %v603_v7 }
 0x253   : > { %631 = vrot.lane.b32.xlu0 %v3984_v9, %s3767_s15  ;;  %v4000_v13 = vrot.slane %v3984_v9, 4 }
 0x254   : > { %v700_v12 = vsel %vm698_vm2, %v3986_v11, 0 }
 0x255   : > { %3275 = vmatpush3.bf16.msra.mxu1 %v700_v12 }
 0x256   : > { %3280 = vmatprep.subr.bf16.mxu1 %v3765_v54 }
 0x257   : > { %743 = vrot.lane.b32.xlu0 %v3984_v9, %s3768_s17 }
 0x25b   : > { %862 = vrot.lane.b32.xlu0 %v3984_v9, %s3769_s19 }
 0x25f   : > { %980 = vrot.lane.b32.xlu0 %v3984_v9, %s3770_s20 }
 0x263   : > { %1211 = vrot.lane.b32.xlu0 %v4000_v13, %s3771_s28 }
 0x267   : > { %1328 = vrot.lane.b32.xlu0 %v4000_v13, %s3772_s29 }
 0x26b   : > { %1445 = vrot.lane.b32.xlu0 %v4000_v13, %s3773_s23 }
 0x2c5   : > { %v632_v14 = vpop.permute.xlu0 %631 }
 0x2c6   : > { %v638_v15 = vsel %vm633_vm3, %v632_v14, 0 }
 0x2c7   : > { %3269 = vmatpush3.bf16.xpose.msra.mxu0 %v638_v15 }
 0x2c8   : > { %3286 = vmatprep.subr.bf16.mxu0 %v3765_v54 }
 0x2c9   : > { %v744_v51 = vpop.permute.xlu0 %743 }
 0x2cd   : > { %v863_v56 = vpop.permute.xlu0 %862 }
 0x2ce   : > { %3271 = vmatmul.mubr.msk.bf16.vlgmr.msra.gmra.mrb[8].mxu0 %vm633_vm3, %v3984_v9 }
 0x2cf   : > { %3288 = vmatprep.mubr.msk.bf16.mxu0 %vm3766_vm1, %v3765_v54 }
 0x2d1   : > { %v981_v60 = vpop.permute.xlu0 %980 }
 0x2d5   : > { %v1212_v0 = vpop.permute.xlu0 %1211 }
 0x2d6   : > { %v1217_v1 = vsel %vm633_vm3, %v1212_v0, 0 }
 0x2d9   : > { %v1329_v4 = vpop.permute.xlu0 %1328 }
 0x2da   : > { %v1334_v5 = vsel %vm633_vm3, %v1329_v4, 0 }
 0x2dd   : > { %v1446_v8 = vpop.permute.xlu0 %1445 }
 0x2de   : > { %v1451_v10 = vsel %vm633_vm3, %v1446_v8, 0 }
 0x2e7   : > { %v611_v16 = vpop.f32.mrb[4].mxu0 }
 0x2e8   : > { %v613_v17 = vpop.f32.mrb[5].mxu0 }
 0x2e9   : > { %v615_v18 = vpop.f32.mrb[6].mxu0 }
 0x2ea   : > { %v4014_v19 = vpack.c.bf16 %v615_v18, %v611_v16  ;;  %v617_v20 = vpop.f32.mrb[7].mxu0 }
 0x2eb   : > { %v4016_v21 = vpack.c.bf16 %v617_v20, %v613_v17 }
 0x2ec   : > { %1561 = vrot.lane.b32.xlu0 %v4014_v19, %s3767_s15  ;;  %v4027_v22 = vrot.slane %v4014_v19, 4 }
 0x2f0   : > { %1670 = vrot.lane.b32.xlu0 %v4014_v19, %s3768_s17 }
 0x2f4   : > { %1788 = vrot.lane.b32.xlu0 %v4014_v19, %s3769_s19 }
 0x2f8   : > { %1905 = vrot.lane.b32.xlu0 %v4014_v19, %s3770_s20 }
 0x2fc   : > { %2135 = vrot.lane.b32.xlu0 %v4027_v22, %s3771_s28 }
 0x300   : > { %2252 = vrot.lane.b32.xlu0 %v4027_v22, %s3772_s29 }
 0x304   : > { %2369 = vrot.lane.b32.xlu0 %v4027_v22, %s3773_s23 }
 0x308   : > { %926 = vrot.lane.b32.xlu0 %v3986_v11, %s3769_s19 }
 0x30c   : > { %1044 = vrot.lane.b32.xlu0 %v3986_v11, %s3770_s20 }
 0x35e   : > { %v1562_v12 = vpop.permute.xlu0 %1561 }
 0x362   : > { %v1671_v15 = vpop.permute.xlu0 %1670 }
 0x366   : > { %v1789_v17 = vpop.permute.xlu0 %1788 }
 0x3a1   : > { %v674_v26 = vpop.f32.mrb[8].mxu0 }
 0x3a2   : > { %v680_v29 = vmul.f32 0.25, %v674_v26  ;;  %v3272_v30 = vpop.f32.mrb[9].mxu0 }
 0x3a3   : > { %v677_v32 = vpop.f32.mrb[10].mxu0 }
 0x3a4   : > { %v3273_v33 = vpop.f32.mrb[11].mxu0  ;;  %v681_v34 = vadd.f32 %v680_v29, %v4042_v28 }
 0x3a6   : > { %v683_v35 = vsel %vm682_vm5, %v681_v34, -inf }
 0x3a7   : > { %684 = vmax.xlane.f32.xlu1 %v683_v35 }
 0x434   : > { %v685_v36 = vpop.xlane.xlu1 %684 }
 0x435   : > { %v686_v37 = vsub.f32 %v681_v34, %v685_v36 }
 0x437   : > { %v687_v38 = vmul.f32 1.442695, %v686_v37 }
 0x439   : > { %3589 = vpow2.f32 %v687_v38 }
 0x443   : > { %v3590_v39 = vpop.eup %3589 }
 0x444   : > { %v689_v40 = vsel %vm682_vm5, %v3590_v39, 0.0 }
 0x445   : > { %690 = vadd.xlane.f32.xlu1 %v689_v40 }
 0x456   : > { %745 = vrot.lane.b32.xlu1 %v3984_v9, %s3771_s28 }
 0x45a   : > { %864 = vrot.lane.b32.xlu1 %v3984_v9, %s3772_s29 }
 0x45e   : > { %982 = vrot.lane.b32.xlu1 %v3984_v9, %s3773_s23 }
 0x462   : > { %1099 = vrot.lane.b32.xlu1 %v4000_v13, %s3767_s15 }
 0x466   : > { %1209 = vrot.lane.b32.xlu1 %v4000_v13, %s3768_s17 }
 0x46a   : > { %1326 = vrot.lane.b32.xlu1 %v4000_v13, %s3769_s19 }
 0x46e   : > { %1443 = vrot.lane.b32.xlu1 %v4000_v13, %s3770_s20 }
 0x472   : > { %1672 = vrot.lane.b32.xlu1 %v4014_v19, %s3771_s28 }
 0x476   : > { %1790 = vrot.lane.b32.xlu1 %v4014_v19, %s3772_s29 }
 0x47a   : > { %1907 = vrot.lane.b32.xlu1 %v4014_v19, %s3773_s23 }
 0x47e   : > { %2023 = vrot.lane.b32.xlu1 %v4027_v22, %s3767_s15  ;;  %s3081_s15 = sshll.u32 %s420_s18, 5 }
 0x482   : > { %2133 = vrot.lane.b32.xlu1 %v4027_v22, %s3768_s17 }
 0x486   : > { %2250 = vrot.lane.b32.xlu1 %v4027_v22, %s3769_s19 }
 0x48a   : > { %2367 = vrot.lane.b32.xlu1 %v4027_v22, %s3770_s20 }
 0x48e   : > { %808 = vrot.lane.b32.xlu1 %v3986_v11, %s3768_s17 }
 0x4d2   : > { %v691_v41 = vpop.xlane.xlu1 %690 }
 0x4d3   : > { %3591 = vrcp.f32 %v691_v41 }
 0x4d6   : > { %v746_v42 = vpop.permute.xlu1 %745 }
 0x4d7   : > { %v751_v48 = vsel %vm633_vm3, %v746_v42, 0 }
 0x4da   : > { %v865_v43 = vpop.permute.xlu1 %864 }
 0x4db   : > { %v870_v52 = vsel %vm633_vm3, %v865_v43, 0 }
 0x4dd   : > { %v3592_v44 = vpop.eup %3591 }
 0x4de   : > { %v983_v45 = vpop.permute.xlu1 %982  ;;  %v693_v46 = vmul.f32 %v3592_v44, %v3590_v39 }
 0x4df   : > { %v988_v57 = vsel %vm633_vm3, %v983_v45, 0 }
 0x4e0   : > { %v694_v47 = vpack.c.bf16 %v693_v46, %v693_v46 }
 0x4e2   : > { %3277 = vmatmul.mubr.msk.bf16.vlgmr.msra.gmra.mrb[0].mxu1 %vm682_vm5, %v694_v47  ;;  %v1100_v49 = vpop.permute.xlu1 %1099 }
 0x4e3   : > { %3281 = vmatpush3.bf16.xpose.msra.mxu1 %v751_v48  ;;  %3282 = vmatprep.mubr.msk.bf16.mxu1 %vm3766_vm1, %v3765_v54  ;;  %v1105_v61 = vsel %vm633_vm3, %v1100_v49, 0 }
 0x4e4   : > { %3292 = vmatprep.subr.bf16.mxu1 %v3765_v54 }
 0x4e6   : > { %v1210_v50 = vpop.permute.xlu1 %1209 }
 0x4ea   : > { %v1327_v53 = vpop.permute.xlu1 %1326  ;;  %3283 = vmatmul.mubr.msk.bf16.vlgmr.msra.gmra.mrb[4].mxu1 %vm633_vm3, %v744_v51 }
 0x4eb   : > { %3293 = vmatpush3.bf16.xpose.msra.mxu1 %v870_v52  ;;  %3294 = vmatprep.mubr.msk.bf16.mxu1 %vm3766_vm1, %v3765_v54 }
 0x4ec   : > { %3304 = vmatprep.subr.bf16.mxu1 %v3765_v54 }
 0x4ee   : > { %v1444_v55 = vpop.permute.xlu1 %1443 }
 0x4f2   : > { %v1673_v58 = vpop.permute.xlu1 %1672  ;;  %3295 = vmatmul.mubr.msk.bf16.vlgmr.msra.gmra.mrb[8].mxu1 %vm633_vm3, %v863_v56 }
 0x4f3   : > { %3305 = vmatpush3.bf16.xpose.msra.mxu1 %v988_v57  ;;  %3306 = vmatprep.mubr.msk.bf16.mxu1 %vm3766_vm1, %v3765_v54  ;;  %v1678_v14 = vsel %vm633_vm3, %v1673_v58, 0  ;;  %v4169_v57 = vrot.slane %v3986_v11, 4 }
 0x4f4   : > { %3316 = vmatprep.subr.bf16.mxu1 %v3765_v54 }
 0x4f6   : > { %v1791_v59 = vpop.permute.xlu1 %1790 }
 0x4f7   : > { %v1796_v16 = vsel %vm633_vm3, %v1791_v59, 0 }
 0x4fa   : > { %v1908_v62 = vpop.permute.xlu1 %1907  ;;  %3307 = vmatmul.mubr.msk.bf16.vlgmr.msra.gmra.mrb[12].mxu1 %vm633_vm3, %v981_v60 }
 0x4fb   : > { %3317 = vmatpush3.bf16.xpose.msra.mxu1 %v1105_v61  ;;  %3318 = vmatprep.mubr.msk.bf16.mxu1 %vm3766_vm1, %v3765_v54  ;;  %v1913_v18 = vsel %vm633_vm3, %v1908_v62, 0 }
 0x4fc   : > { %3328 = vmatprep.subr.bf16.mxu1 %v3765_v54 }
 0x4fe   : > { %v2024_v63 = vpop.permute.xlu1 %2023 }
 0x4ff   : > { %v2029_v20 = vsel %vm633_vm3, %v2024_v63, 0 }
 0x502   : > { %v2134_v2 = vpop.permute.xlu1 %2133  ;;  %3319 = vmatmul.mubr.msk.bf16.vlgmr.msra.gmra.mrb[16].mxu1 %vm633_vm3, %v4000_v13  ;;  %v1567_v13 = vsel %vm633_vm3, %v1562_v12, 0 }
 0x503   : > { %3329 = vmatpush3.bf16.xpose.msra.mxu1 %v1217_v1  ;;  %3330 = vmatprep.mubr.msk.bf16.mxu1 %vm3766_vm1, %v3765_v54 }
 0x504   : > { %3340 = vmatprep.subr.bf16.mxu1 %v3765_v54 }
 0x506   : > { %v2251_v3 = vpop.permute.xlu1 %2250 }
 0x50a   : > { %v2368_v6 = vpop.permute.xlu1 %2367  ;;  %3331 = vmatmul.mubr.msk.bf16.vlgmr.msra.gmra.mrb[20].mxu1 %vm633_vm3, %v1210_v50 }
 0x50b   : > { %3341 = vmatpush3.bf16.xpose.msra.mxu1 %v1334_v5  ;;  %3342 = vmatprep.mubr.msk.bf16.mxu1 %vm3766_vm1, %v3765_v54 }
 0x50c   : > { %3352 = vmatprep.subr.bf16.mxu1 %v3765_v54 }
 0x50e   : > { %v809_v7 = vpop.permute.xlu1 %808 }
 0x50f   : > { %v814_v9 = vsel %vm698_vm2, %v809_v7, 0 }
 0x510   : > { %3287 = vmatpush3.bf16.msra.mxu0 %v814_v9 }
 0x511   : > { %3298 = vmatprep.subr.bf16.mxu0 %v3765_v54 }
 0x512   : > { %3343 = vmatmul.mubr.msk.bf16.vlgmr.msra.gmra.mrb[24].mxu1 %vm633_vm3, %v1327_v53 }
 0x513   : > { %3353 = vmatpush3.bf16.xpose.msra.mxu1 %v1451_v10  ;;  %3354 = vmatprep.mubr.msk.bf16.mxu1 %vm3766_vm1, %v3765_v54 }
 0x514   : > { %3364 = vmatprep.subr.bf16.mxu1 %v3765_v54 }
 0x51a   : > { %3355 = vmatmul.mubr.msk.bf16.vlgmr.msra.gmra.mrb[28].mxu1 %vm633_vm3, %v1444_v55 }
 0x51b   : > { %3365 = vmatpush3.bf16.xpose.msra.mxu1 %v1567_v13  ;;  %3366 = vmatprep.mubr.msk.bf16.mxu1 %vm3766_vm1, %v3765_v54 }
 0x51c   : > { %3376 = vmatprep.subr.bf16.mxu1 %v3765_v54 }
 0x522   : > { %3367 = vmatmul.mubr.msk.bf16.vlgmr.msra.gmra.mrb[32].mxu1 %vm633_vm3, %v4014_v19  ;;  %v1906_v19 = vpop.permute.xlu0 %1905 }
 0x523   : > { %3377 = vmatpush3.bf16.xpose.msra.mxu1 %v1678_v14  ;;  %3378 = vmatprep.mubr.msk.bf16.mxu1 %vm3766_vm1, %v3765_v54 }
 0x524   : > { %3388 = vmatprep.subr.bf16.mxu1 %v3765_v54 }
 0x526   : > { %v2136_v23 = vpop.permute.xlu0 %2135 }
 0x527   : > { %v2141_v25 = vsel %vm633_vm3, %v2136_v23, 0 }
 0x52a   : > { %3379 = vmatmul.mubr.msk.bf16.vlgmr.msra.gmra.mrb[36].mxu1 %vm633_vm3, %v1671_v15  ;;  %v2253_v26 = vpop.permute.xlu0 %2252 }
 0x52b   : > { %3389 = vmatpush3.bf16.xpose.msra.mxu1 %v1796_v16  ;;  %3390 = vmatprep.mubr.msk.bf16.mxu1 %vm3766_vm1, %v3765_v54  ;;  %v2258_v27 = vsel %vm633_vm3, %v2253_v26, 0 }
 0x52c   : > { %3400 = vmatprep.subr.bf16.mxu1 %v3765_v54 }
 0x52e   : > { %v2370_v29 = vpop.permute.xlu0 %2369 }
 0x532   : > { %3391 = vmatmul.mubr.msk.bf16.vlgmr.msra.gmra.mrb[40].mxu1 %vm633_vm3, %v1789_v17 }
 0x533   : > { %3401 = vmatpush3.bf16.xpose.msra.mxu1 %v1913_v18  ;;  %3402 = vmatprep.mubr.msk.bf16.mxu1 %vm3766_vm1, %v3765_v54 }
 0x534   : > { %3412 = vmatprep.subr.bf16.mxu1 %v3765_v54 }
 0x53a   : > { %3403 = vmatmul.mubr.msk.bf16.vlgmr.msra.gmra.mrb[44].mxu1 %vm633_vm3, %v1906_v19 }
 0x53b   : > { %3413 = vmatpush3.bf16.xpose.msra.mxu1 %v2029_v20  ;;  %3414 = vmatprep.mubr.msk.bf16.mxu1 %vm3766_vm1, %v3765_v54 }
 0x53c   : > { %3424 = vmatprep.subr.bf16.mxu1 %v3765_v54 }
 0x542   : > { %3415 = vmatmul.mubr.msk.bf16.vlgmr.msra.gmra.mrb[48].mxu1 %vm633_vm3, %v4027_v22  ;;  %v2375_v22 = vsel %vm633_vm3, %v2370_v29, 0 }
 0x543   : > { %3425 = vmatpush3.bf16.xpose.msra.mxu1 %v2141_v25  ;;  %3426 = vmatprep.mubr.msk.bf16.mxu1 %vm3766_vm1, %v3765_v54 }
 0x544   : > { %3436 = vmatprep.subr.bf16.mxu1 %v3765_v54 }
 0x54a   : > { %3427 = vmatmul.mubr.msk.bf16.vlgmr.msra.gmra.mrb[52].mxu1 %vm633_vm3, %v2134_v2 }
 0x54b   : > { %3437 = vmatpush3.bf16.xpose.msra.mxu1 %v2258_v27  ;;  %3438 = vmatprep.mubr.msk.bf16.mxu1 %vm3766_vm1, %v3765_v54 }
 0x54c   : > { %3448 = vmatprep.subr.bf16.mxu1 %v3765_v54 }
 0x552   : > { %3439 = vmatmul.mubr.msk.bf16.vlgmr.msra.gmra.mrb[56].mxu1 %vm633_vm3, %v2251_v3 }
 0x553   : > { %3449 = vmatpush3.bf16.xpose.msra.mxu1 %v2375_v22  ;;  %3450 = vmatprep.mubr.msk.bf16.mxu1 %vm3766_vm1, %v3765_v54 }
 0x55a   : > { %3451 = vmatmul.mubr.msk.bf16.vlgmr.msra.gmra.mrb[60].mxu1 %vm633_vm3, %v2368_v6 }
 0x5b5   : > { %v736_v30 = vpop.f32.mrb[0].mxu1 }
 0x5b6   : > { %742 = vst.msk [vmem:[#allocation2] sm:$0xff] %vm633_vm3, %v736_v30  ;;  %v3278_v32 = vpop.f32.mrb[1].mxu1 }
 0x5b7   : > { %v739_v33 = vpop.f32.mrb[2].mxu1 }
 0x5b8   : > { %v3279_v34 = vpop.f32.mrb[3].mxu1 }
 0x5bd   : > { %v787_v35 = vpop.f32.mrb[4].mxu1 }
 0x5be   : > { %v793_v36 = vmul.f32 0.25, %v787_v35  ;;  %v3284_v37 = vpop.f32.mrb[5].mxu1 }
 0x5bf   : > { %v790_v38 = vpop.f32.mrb[6].mxu1 }
 0x5c0   : > { %v3285_v39 = vpop.f32.mrb[7].mxu1  ;;  %v4159_v40 = vadd.f32 %v793_v36, %v4042_v28 }
 0x5c2   : > { %v795_v41 = vsel %vm682_vm5, %v4159_v40, -inf }
 0x5c3   : > { %796 = vmax.xlane.f32.xlu0 %v795_v41 }
 0x5c5   : > { %v906_v42 = vpop.f32.mrb[8].mxu1 }
 0x5c6   : > { %v912_v43 = vmul.f32 0.25, %v906_v42  ;;  %v3296_v44 = vpop.f32.mrb[9].mxu1 }
 0x5c7   : > { %v909_v45 = vpop.f32.mrb[10].mxu1 }
 0x5c8   : > { %v3297_v46 = vpop.f32.mrb[11].mxu1  ;;  %v4164_v47 = vadd.f32 %v912_v43, %v4042_v28 }
 0x5ca   : > { %v914_v48 = vsel %vm682_vm5, %v4164_v47, -inf }
 0x5cb   : > { %915 = vmax.xlane.f32.xlu1 %v914_v48 }
 0x5cd   : > { %v1024_v49 = vpop.f32.mrb[12].mxu1 }
 0x5ce   : > { %v3308_v50 = vpop.f32.mrb[13].mxu1  ;;  %v1030_v5 = vmul.f32 0.25, %v1024_v49 }
 0x5cf   : > { %v1027_v51 = vpop.f32.mrb[14].mxu1 }
 0x5d0   : > { %v3309_v52 = vpop.f32.mrb[15].mxu1  ;;  %v4176_v8 = vadd.f32 %v1030_v5, %v4042_v28 }
 0x5d2   : > { %v1032_v15 = vsel %vm682_vm5, %v4176_v8, -inf }
 0x5d5   : > { %v1141_v53 = vpop.f32.mrb[16].mxu1 }
 0x5d6   : > { %v3320_v55 = vpop.f32.mrb[17].mxu1  ;;  %v1147_v7 = vmul.f32 0.25, %v1141_v53 }
 0x5d7   : > { %v1144_v56 = vpop.f32.mrb[18].mxu1 }
 0x5d8   : > { %v3321_v58 = vpop.f32.mrb[19].mxu1  ;;  %v4181_v16 = vadd.f32 %v1147_v7, %v4042_v28 }
 0x5d9   : > { %1390 = vrot.lane.b32.xlu0 %v4169_v57, %s3769_s19 }
 0x5da   : > { %v1149_v19 = vsel %vm682_vm5, %v4181_v16, -inf }
 0x5dc   : > { %1273 = vrot.lane.b32.xlu1 %v4169_v57, %s3768_s17 }
 0x5dd   : > { %v1253_v59 = vpop.f32.mrb[20].mxu1 }
 0x5de   : > { %v3332_v60 = vpop.f32.mrb[21].mxu1  ;;  %v1259_v12 = vmul.f32 0.25, %v1253_v59 }
 0x5df   : > { %v1256_v61 = vpop.f32.mrb[22].mxu1 }
 0x5e0   : > { %v3333_v62 = vpop.f32.mrb[23].mxu1  ;;  %v4186_v20 = vadd.f32 %v1259_v12, %v4042_v28 }
 0x5e2   : > { %v1261_v29 = vsel %vm682_vm5, %v4186_v20, -inf }
 0x5e5   : > { %v1370_v63 = vpop.f32.mrb[24].mxu1 }
 0x5e6   : > { %v3344_v0 = vpop.f32.mrb[25].mxu1  ;;  %v1376_v13 = vmul.f32 0.25, %v1370_v63 }
 0x5e7   : > { %v1373_v1 = vpop.f32.mrb[26].mxu1 }
 0x5e8   : > { %v3345_v2 = vpop.f32.mrb[27].mxu1  ;;  %v4189_v23 = vadd.f32 %v1376_v13, %v4042_v28 }
 0x5ea   : > { %v1378_v22 = vsel %vm682_vm5, %v4189_v23, -inf }
 0x5ed   : > { %v1487_v3 = vpop.f32.mrb[28].mxu1 }
 0x5ee   : > { %v3356_v4 = vpop.f32.mrb[29].mxu1  ;;  %v1493_v61 = vmul.f32 0.25, %v1487_v3 }
 0x5ef   : > { %v1490_v11 = vpop.f32.mrb[30].mxu1 }
 0x5f0   : > { %v3357_v6 = vpop.f32.mrb[31].mxu1  ;;  %v4208_v4 = vadd.f32 %v1493_v61, %v4042_v28 }
 0x5f2   : > { %v1495_v11 = vsel %vm682_vm5, %v4208_v4, -inf }
 0x5f5   : > { %v1603_v9 = vpop.f32.mrb[32].mxu1 }
 0x5f6   : > { %v3368_v10 = vpop.f32.mrb[33].mxu1  ;;  %v1609_v18 = vmul.f32 0.25, %v1603_v9 }
 0x5f7   : > { %v1606_v14 = vpop.f32.mrb[34].mxu1 }
 0x5f8   : > { %1033 = vmax.xlane.f32.xlu0 %v1032_v15  ;;  %v3369_v17 = vpop.f32.mrb[35].mxu1  ;;  %v4196_v30 = vadd.f32 %v1609_v18, %v4042_v28 }
 0x5fa   : > { %v1611_v33 = vsel %vm682_vm5, %v4196_v30, -inf }
 0x5fc   : > { %1150 = vmax.xlane.f32.xlu0 %v1149_v19 }
 0x5fd   : > { %v1714_v25 = vpop.f32.mrb[36].mxu1 }
 0x5fe   : > { %v3380_v26 = vpop.f32.mrb[37].mxu1  ;;  %v1720_v1 = vmul.f32 0.25, %v1714_v25 }
 0x5ff   : > { %v1717_v27 = vpop.f32.mrb[38].mxu1  ;;  %v4235_v26 = vpop.permute.xlu0 %926 }
 0x600   : > { %1262 = vmax.xlane.f32.xlu0 %v1261_v29  ;;  %1379 = vmax.xlane.f32.xlu1 %v1378_v22  ;;  %v3381_v32 = vpop.f32.mrb[39].mxu1  ;;  %v4213_v6 = vadd.f32 %v1720_v1, %v4042_v28 }
 0x602   : > { %v1722_v3 = vsel %vm682_vm5, %v4213_v6, -inf }
 0x603   : > { %v4242_v22 = vpop.permute.xlu0 %1044 }
 0x604   : > { %1612 = vmax.xlane.f32.xlu1 %v1611_v33 }
 0x605   : > { %v1832_v34 = vpop.f32.mrb[40].mxu1 }
 0x606   : > { %v1838_v35 = vmul.f32 0.25, %v1832_v34  ;;  %v3392_v36 = vpop.f32.mrb[41].mxu1 }
 0x607   : > { %v1835_v37 = vpop.f32.mrb[42].mxu1 }
 0x608   : > { %v3393_v38 = vpop.f32.mrb[43].mxu1  ;;  %v4201_v39 = vadd.f32 %v1838_v35, %v4042_v28 }
 0x60a   : > { %v1840_v41 = vsel %vm682_vm5, %v4201_v39, -inf }
 0x60b   : > { %1841 = vmax.xlane.f32.xlu1 %v1840_v41 }
 0x60d   : > { %v1949_v42 = vpop.f32.mrb[44].mxu1 }
 0x60e   : > { %v3404_v43 = vpop.f32.mrb[45].mxu1  ;;  %v1955_v5 = vmul.f32 0.25, %v1949_v42 }
 0x60f   : > { %v1952_v44 = vpop.f32.mrb[46].mxu1 }
 0x610   : > { %v3405_v45 = vpop.f32.mrb[47].mxu1  ;;  %v4218_v9 = vadd.f32 %v1955_v5, %v4042_v28 }
 0x612   : > { %v1957_v12 = vsel %vm682_vm5, %v4218_v9, -inf }
 0x615   : > { %v2065_v46 = vpop.f32.mrb[48].mxu1 }
 0x616   : > { %1507 = vrot.lane.b32.xlu0 %v4169_v57, %s3770_s20  ;;  %v3416_v48 = vpop.f32.mrb[49].mxu1  ;;  %v2071_v7 = vmul.f32 0.25, %v2065_v46 }
 0x617   : > { %v2068_v49 = vpop.f32.mrb[50].mxu1 }
 0x618   : > { %v3417_v50 = vpop.f32.mrb[51].mxu1  ;;  %v4223_v13 = vadd.f32 %v2071_v7, %v4042_v28 }
 0x61a   : > { %v2073_v15 = vsel %vm682_vm5, %v4223_v13, -inf }
 0x61d   : > { %v2177_v51 = vpop.f32.mrb[52].mxu1 }
 0x61e   : > { %v3428_v52 = vpop.f32.mrb[53].mxu1  ;;  %v2183_v10 = vmul.f32 0.25, %v2177_v51 }
 0x61f   : > { %v2180_v53 = vpop.f32.mrb[54].mxu1 }
 0x620   : > { %v3429_v55 = vpop.f32.mrb[55].mxu1  ;;  %v4228_v17 = vadd.f32 %v2183_v10, %v4042_v28 }
 0x622   : > { %v2185_v19 = vsel %vm682_vm5, %v4228_v17, -inf }
 0x625   : > { %v2294_v56 = vpop.f32.mrb[56].mxu1 }
 0x626   : > { %v3440_v58 = vpop.f32.mrb[57].mxu1  ;;  %v2300_v14 = vmul.f32 0.25, %v2294_v56 }
 0x627   : > { %v2297_v59 = vpop.f32.mrb[58].mxu1 }
 0x628   : > { %v3441_v60 = vpop.f32.mrb[59].mxu1  ;;  %v4233_v25 = vadd.f32 %v2300_v14, %v4042_v28 }
 0x62a   : > { %v2302_v27 = vsel %vm682_vm5, %v4233_v25, -inf }
 0x62d   : > { %v2411_v62 = vpop.f32.mrb[60].mxu1 }
 0x62e   : > { %v3452_v63 = vpop.f32.mrb[61].mxu1  ;;  %v2417_v18 = vmul.f32 0.25, %v2411_v62 }
 0x62f   : > { %v2414_v0 = vpop.f32.mrb[62].mxu1 }
 0x630   : > { %v3453_v2 = vpop.f32.mrb[63].mxu1  ;;  %v4240_v29 = vadd.f32 %v2417_v18, %v4042_v28 }
 0x632   : > { %v2419_v32 = vsel %vm682_vm5, %v4240_v29, -inf }
 0x635   : > { %1496 = vmax.xlane.f32.xlu0 %v1495_v11 }
 0x639   : > { %1723 = vmax.xlane.f32.xlu0 %v1722_v3 }
 0x63d   : > { %1958 = vmax.xlane.f32.xlu0 %v1957_v12 }
 0x641   : > { %2074 = vmax.xlane.f32.xlu0 %v2073_v15 }
 0x645   : > { %2186 = vmax.xlane.f32.xlu0 %v2185_v19 }
 0x649   : > { %2303 = vmax.xlane.f32.xlu0 %v2302_v27 }
 0x64d   : > { %2420 = vmax.xlane.f32.xlu0 %v2419_v32 }
 0x650   : > { %v797_v33 = vpop.xlane.xlu0 %796 }
 0x651   : > { %v798_v34 = vsub.f32 %v4159_v40, %v797_v33 }
 0x653   : > { %v799_v35 = vmul.f32 1.442695, %v798_v34 }
 0x654   : > { %v4256_v40 = vpop.permute.xlu0 %1390 }
 0x655   : > { %3593 = vpow2.f32 %v799_v35 }
 0x658   : > { %v916_v36 = vpop.xlane.xlu1 %915 }
 0x659   : > { %v917_v37 = vsub.f32 %v4164_v47, %v916_v36 }
 0x65b   : > { %v918_v38 = vmul.f32 1.442695, %v917_v37 }
 0x65d   : > { %3595 = vpow2.f32 %v918_v38 }
 0x65f   : > { %v4248_v41 = vpop.eup %3593 }
 0x660   : > { %v801_v28 = vsel %vm682_vm5, %v4248_v41, 0.0 }
 0x661   : > { %802 = vadd.xlane.f32.xlu1 %v801_v28 }
 0x667   : > { %v4252_v42 = vpop.eup %3595 }
 0x668   : > { %v920_v43 = vsel %vm682_vm5, %v4252_v42, 0.0 }
 0x669   : > { %921 = vadd.xlane.f32.xlu1 %v920_v43 }
 0x685   : > { %v1034_v44 = vpop.xlane.xlu0 %1033 }
 0x686   : > { %v1035_v45 = vsub.f32 %v4176_v8, %v1034_v44  ;;  %v4270_v8 = vpop.permute.xlu1 %1273 }
 0x688   : > { %v1036_v47 = vmul.f32 1.442695, %v1035_v45 }
 0x689   : > { %v1151_v46 = vpop.xlane.xlu0 %1150 }
 0x68a   : > { %3597 = vpow2.f32 %v1036_v47  ;;  %v1152_v56 = vsub.f32 %v4181_v16, %v1151_v46 }
 0x68c   : > { %v1153_v58 = vmul.f32 1.442695, %v1152_v56 }
 0x68d   : > { %v1263_v48 = vpop.xlane.xlu0 %1262 }
 0x68e   : > { %v1264_v49 = vsub.f32 %v4186_v20, %v1263_v48  ;;  %v1380_v20 = vpop.xlane.xlu1 %1379 }
 0x68f   : > { %v1381_v59 = vsub.f32 %v4189_v23, %v1380_v20 }
 0x690   : > { %v1265_v50 = vmul.f32 1.442695, %v1264_v49 }
 0x691   : > { %v1382_v61 = vmul.f32 1.442695, %v1381_v59  ;;  %v4277_v63 = vpop.permute.xlu0 %1507  ;;  %v932_v59 = vsel %vm698_vm2, %v4235_v26, 0  ;;  %v1050_v26 = vsel %vm698_vm2, %v4242_v22, 0 }
 0x692   : > { %3599 = vpow2.f32 %v1265_v50  ;;  %v1613_v60 = vpop.xlane.xlu1 %1612  ;;  %v4322_v50 = vrot.slane %v4016_v21, 4 }
 0x693   : > { %3601 = vpow2.f32 %v1153_v58  ;;  %v1614_v62 = vsub.f32 %v4196_v30, %v1613_v60 }
 0x694   : > { %v4260_v51 = vpop.eup %3597  ;;  %3603 = vpow2.f32 %v1382_v61 }
 0x695   : > { %v1038_v52 = vsel %vm682_vm5, %v4260_v51, 0.0  ;;  %v1615_v1 = vmul.f32 1.442695, %v1614_v62 }
 0x696   : > { %1039 = vadd.xlane.f32.xlu1 %v1038_v52 }
 0x697   : > { %3605 = vpow2.f32 %v1615_v1 }
 0x698   : > { %v1842_v0 = vpop.xlane.xlu1 %1841 }
 0x699   : > { %v1843_v2 = vsub.f32 %v4201_v39, %v1842_v0 }
 0x69b   : > { %v1844_v11 = vmul.f32 1.442695, %v1843_v2 }
 0x69c   : > { %v4264_v53 = vpop.eup %3599 }
 0x69d   : > { %v1267_v55 = vsel %vm682_vm5, %v4264_v53, 0.0  ;;  %v4281_v23 = vpop.eup %3601 }
 0x69e   : > { %1268 = vadd.xlane.f32.xlu0 %v1267_v55  ;;  %v1155_v14 = vsel %vm682_vm5, %v4281_v23, 0.0  ;;  %v4286_v15 = vpop.eup %3603 }
 0x69f   : > { %v1384_v19 = vsel %vm682_vm5, %v4286_v15, 0.0 }
 0x6a1   : > { %v4291_v27 = vpop.eup %3605 }
 0x6a2   : > { %v1617_v35 = vsel %vm682_vm5, %v4291_v27, 0.0 }
 0x6a7   : > { %1735 = vrot.lane.b32.xlu1 %v4016_v21, %s3768_s17 }
 0x6b4   : > { %1852 = vrot.lane.b32.xlu0 %v4016_v21, %s3769_s19 }
 0x6c2   : > { %v1497_v5 = vpop.xlane.xlu0 %1496 }
 0x6c3   : > { %v1498_v16 = vsub.f32 %v4208_v4, %v1497_v5 }
 0x6c5   : > { %v1499_v7 = vmul.f32 1.442695, %v1498_v16 }
 0x6c6   : > { %v1724_v3 = vpop.xlane.xlu0 %1723 }
 0x6c7   : > { %3607 = vpow2.f32 %v1499_v7  ;;  %v1725_v10 = vsub.f32 %v4213_v6, %v1724_v3 }
 0x6c8   : > { %3609 = vpow2.f32 %v1844_v11 }
 0x6c9   : > { %v1726_v30 = vmul.f32 1.442695, %v1725_v10  ;;  %v1166_v10 = vsel %vm698_vm2, %v4169_v57, 0  ;;  %v1279_v57 = vsel %vm698_vm2, %v4270_v8, 0 }
 0x6ca   : > { %v1959_v12 = vpop.xlane.xlu0 %1958 }
 0x6cb   : > { %3611 = vpow2.f32 %v1726_v30  ;;  %v1960_v39 = vsub.f32 %v4218_v9, %v1959_v12  ;;  %1156 = vadd.xlane.f32.xlu1 %v1155_v14 }
 0x6cd   : > { %v1961_v4 = vmul.f32 1.442695, %v1960_v39 }
 0x6ce   : > { %v2075_v18 = vpop.xlane.xlu0 %2074 }
 0x6cf   : > { %3613 = vpow2.f32 %v1961_v4  ;;  %v2076_v6 = vsub.f32 %v4223_v13, %v2075_v18  ;;  %1385 = vadd.xlane.f32.xlu1 %v1384_v19 }
 0x6d1   : > { %v4294_v32 = vpop.eup %3607  ;;  %v2077_v33 = vmul.f32 1.442695, %v2076_v6 }
 0x6d2   : > { %v2187_v34 = vpop.xlane.xlu0 %2186  ;;  %v1501_v9 = vsel %vm682_vm5, %v4294_v32, 0.0  ;;  %v4300_v36 = vpop.eup %3609 }
 0x6d3   : > { %3615 = vpow2.f32 %v2077_v33  ;;  %v2188_v37 = vsub.f32 %v4228_v17, %v2187_v34  ;;  %1618 = vadd.xlane.f32.xlu1 %v1617_v35  ;;  %1502 = vadd.xlane.f32.xlu0 %v1501_v9  ;;  %v1846_v28 = vsel %vm682_vm5, %v4300_v36, 0.0  ;;  %v1396_v9 = vsel %vm698_vm2, %v4256_v40, 0 }
 0x6d5   : > { %v4303_v38 = vpop.eup %3611  ;;  %v2189_v13 = vmul.f32 1.442695, %v2188_v37 }
 0x6d6   : > { %v1728_v43 = vsel %vm682_vm5, %v4303_v38, 0.0  ;;  %v2304_v20 = vpop.xlane.xlu0 %2303 }
 0x6d7   : > { %3617 = vpow2.f32 %v2189_v13  ;;  %1847 = vadd.xlane.f32.xlu1 %v1846_v28  ;;  %1729 = vadd.xlane.f32.xlu0 %v1728_v43  ;;  %v2305_v60 = vsub.f32 %v4233_v25, %v2304_v20  ;;  %v1513_v28 = vsel %vm698_vm2, %v4277_v63, 0 }
 0x6d9   : > { %v4309_v44 = vpop.eup %3613  ;;  %v2306_v0 = vmul.f32 1.442695, %v2305_v60 }
 0x6da   : > { %v1963_v45 = vsel %vm682_vm5, %v4309_v44, 0.0  ;;  %v2421_v61 = vpop.xlane.xlu0 %2420 }
 0x6db   : > { %1964 = vadd.xlane.f32.xlu0 %v1963_v45  ;;  %v2422_v1 = vsub.f32 %v4240_v29, %v2421_v61 }
 0x6dd   : > { %v4313_v17 = vpop.eup %3615  ;;  %v2423_v25 = vmul.f32 1.442695, %v2422_v1 }
 0x6de   : > { %v2079_v47 = vsel %vm682_vm5, %v4313_v17, 0.0 }
 0x6df   : > { %2080 = vadd.xlane.f32.xlu1 %v2079_v47  ;;  %v1627_v47 = vsel %vm698_vm2, %v4016_v21, 0 }
 0x6e1   : > { %v4317_v46 = vpop.eup %3617 }
 0x6e2   : > { %v2191_v48 = vsel %vm682_vm5, %v4317_v46, 0.0 }
 0x6e3   : > { %2192 = vadd.xlane.f32.xlu0 %v2191_v48 }
 0x6ee   : > { %v803_v49 = vpop.xlane.xlu1 %802 }
 0x6ef   : > { %3619 = vrcp.f32 %v803_v49 }
 0x6f0   : > { %2197 = vrot.lane.b32.xlu1 %v4322_v50, %s3768_s17  ;;  %s422_s17 = scalar_lea.vmem [#allocation6], %s3081_s15 }
 0x6f6   : > { %v922_v52 = vpop.xlane.xlu1 %921 }
 0x6f7   : > { %3621 = vrcp.f32 %v922_v52 }
 0x6f8   : > { %3623 = vpow2.f32 %v2306_v0 }
 0x6f9   : > { %v3620_v55 = vpop.eup %3619  ;;  %1969 = vrot.lane.b32.xlu0 %v4016_v21, %s3770_s20  ;;  %3625 = vpow2.f32 %v2423_v25 }
 0x6fa   : > { %v805_v56 = vmul.f32 %v3620_v55, %v4248_v41 }
 0x6fc   : > { %v806_v58 = vpack.c.bf16 %v805_v56, %v805_v56 }
 0x6fe   : > { %3289 = vmatmul.mubr.msk.bf16.vlgmr.msra.gmra.mrb[12].mxu0 %vm682_vm5, %v806_v58 }
 0x6ff   : > { %3299 = vmatpush3.bf16.msra.mxu0 %v932_v59  ;;  %3300 = vmatprep.mubr.msk.bf16.mxu0 %vm3766_vm1, %v3765_v54 }
 0x700   : > { %3310 = vmatprep.subr.bf16.mxu0 %v3765_v54 }
 0x701   : > { %v3622_v62 = vpop.eup %3621 }
 0x702   : > { %v924_v41 = vmul.f32 %v3622_v62, %v4252_v42  ;;  %v4344_v5 = vpop.eup %3623 }
 0x703   : > { %v2308_v29 = vsel %vm682_vm5, %v4344_v5, 0.0  ;;  %v4348_v42 = vpop.eup %3625 }
 0x704   : > { %v925_v2 = vpack.c.bf16 %v924_v41, %v924_v41  ;;  %v2425_v22 = vsel %vm682_vm5, %v4348_v42, 0.0 }
 0x706   : > { %3301 = vmatmul.mubr.msk.bf16.vlgmr.msra.gmra.mrb[16].mxu0 %vm682_vm5, %v925_v2 }
 0x707   : > { %3311 = vmatpush3.bf16.msra.mxu0 %v1050_v26  ;;  %3312 = vmatprep.mubr.msk.bf16.mxu0 %vm3766_vm1, %v3765_v54  ;;  %v2090_v26 = vsel %vm698_vm2, %v4322_v50, 0 }
 0x708   : > { %3322 = vmatprep.subr.bf16.mxu0 %v3765_v54 }
 0x714   : > { %2309 = vadd.xlane.f32.xlu1 %v2308_v29 }
 0x718   : > { %2426 = vadd.xlane.f32.xlu0 %v2425_v22 }
 0x723   : > { %v1040_v16 = vpop.xlane.xlu1 %1039 }
 0x724   : > { %3627 = vrcp.f32 %v1040_v16 }
 0x725   : > { %2314 = vrot.lane.b32.xlu1 %v4322_v50, %s3769_s19  ;;  %s3169_s19 = sshll.u32 %s3864_s25, 9  ;;  %s4626_s25 = scalar_lea.sflag [#allocation5], %s420_s18 }
 0x727   : > { %v1736_v30 = vpop.permute.xlu1 %1735 }
 0x728   : > { %v1741_v52 = vsel %vm698_vm2, %v1736_v30, 0 }
 0x72b   : > { %v1269_v14 = vpop.xlane.xlu0 %1268 }
 0x72e   : > { %v3628_v11 = vpop.eup %3627  ;;  %2431 = vrot.lane.b32.xlu0 %v4322_v50, %s3770_s20  ;;  %s3001_s20 = sshll.u32 %s422_s17, 4  ;;  %s4619_s20 = int_to_ptr.vmem [resolvable:$true] %s3001_s20 }
 0x72f   : > { %v1042_v7 = vmul.f32 %v3628_v11, %v4260_v51  ;;  %v1853_v18 = vpop.permute.xlu0 %1852  ;;  %s3693_s30 = scalar_lea.vmem %s4619_s20, 512 }
 0x730   : > { %v1858_v58 = vsel %vm698_vm2, %v1853_v18, 0  ;;  %p3694_p6 = scmp.ne.s32.totalorder %s4619_s20, %s3693_s30 }
 0x731   : > { %v1043_v3 = vpack.c.bf16 %v1042_v7, %v1042_v7 }
 0x732   : > { %p3695_p10 = pnand %p3694_p6, %p4693_p9 }
 0x733   : > { %3313 = vmatmul.mubr.msk.bf16.vlgmr.msra.gmra.mrb[20].mxu0 %vm682_vm5, %v1043_v3 }
 0x734   : > { %3323 = vmatpush3.bf16.msra.mxu0 %v1166_v10  ;;  %3324 = vmatprep.mubr.msk.bf16.mxu0 %vm3766_vm1, %v3765_v54  ;;  %p3696_p12 = pneg %p3695_p10 }
 0x735   : > { %3334 = vmatprep.subr.bf16.mxu0 %v3765_v54 }
 0x758   : > { %v1157_v12 = vpop.xlane.xlu1 %1156 }
 0x759   : > { %3629 = vrcp.f32 %v1157_v12 }
 0x75a   : > { %3631 = vrcp.f32 %v1269_v14 }
 0x75c   : > { %v1386_v39 = vpop.xlane.xlu1 %1385 }
 0x75d   : > { %3633 = vrcp.f32 %v1386_v39 }
 0x760   : > { %v1503_v34 = vpop.xlane.xlu0 %1502  ;;  %v1619_v37 = vpop.xlane.xlu1 %1618 }
 0x761   : > { %3635 = vrcp.f32 %v1503_v34 }
 0x762   : > { %3637 = vrcp.f32 %v1619_v37 }
 0x763   : > { %v3630_v4 = vpop.eup %3629 }
 0x764   : > { %v1159_v51 = vmul.f32 %v3630_v4, %v4281_v23  ;;  %v3632_v6 = vpop.eup %3631  ;;  %v1730_v43 = vpop.xlane.xlu0 %1729 }
 0x765   : > { %v1271_v33 = vmul.f32 %v3632_v6, %v4264_v53  ;;  %3639 = vrcp.f32 %v1730_v43  ;;  %v1848_v48 = vpop.xlane.xlu1 %1847 }
 0x766   : > { %v1160_v19 = vpack.c.bf16 %v1159_v51, %v1159_v51  ;;  %3641 = vrcp.f32 %v1848_v48 }
 0x767   : > { %v1272_v23 = vpack.c.bf16 %v1271_v33, %v1271_v33  ;;  %v3634_v35 = vpop.eup %3633 }
 0x768   : > { %3325 = vmatmul.mubr.msk.bf16.vlgmr.msra.gmra.mrb[24].mxu0 %vm682_vm5, %v1160_v19  ;;  %v1388_v8 = vmul.f32 %v3634_v35, %v4286_v15  ;;  %v1965_v55 = vpop.xlane.xlu0 %1964 }
 0x769   : > { %3335 = vmatpush3.bf16.msra.mxu0 %v1279_v57  ;;  %3336 = vmatprep.mubr.msk.bf16.mxu0 %vm3766_vm1, %v3765_v54  ;;  %3643 = vrcp.f32 %v1965_v55 }
 0x76a   : > { %3346 = vmatprep.subr.bf16.mxu0 %v3765_v54  ;;  %v1389_v53 = vpack.c.bf16 %v1388_v8, %v1388_v8 }
 0x76b   : > { %v3636_v13 = vpop.eup %3635 }
 0x76c   : > { %v1505_v40 = vmul.f32 %v3636_v13, %v4294_v32  ;;  %v3638_v45 = vpop.eup %3637  ;;  %v2081_v60 = vpop.xlane.xlu1 %2080 }
 0x76d   : > { %v1621_v63 = vmul.f32 %v3638_v45, %v4291_v27  ;;  %3645 = vrcp.f32 %v2081_v60 }
 0x76e   : > { %v1506_v15 = vpack.c.bf16 %v1505_v40, %v1505_v40 }
 0x76f   : > { %v1622_v32 = vpack.c.bf16 %v1621_v63, %v1621_v63  ;;  %v3640_v49 = vpop.eup %3639 }
 0x770   : > { %3337 = vmatmul.mubr.msk.bf16.vlgmr.msra.gmra.mrb[28].mxu0 %vm682_vm5, %v1272_v23  ;;  %v1732_v21 = vmul.f32 %v3640_v49, %v4303_v38  ;;  %v3642_v20 = vpop.eup %3641  ;;  %v2193_v56 = vpop.xlane.xlu0 %2192 }
 0x771   : > { %3347 = vmatpush3.bf16.msra.mxu0 %v1396_v9  ;;  %3348 = vmatprep.mubr.msk.bf16.mxu0 %vm3766_vm1, %v3765_v54  ;;  %v1850_v59 = vmul.f32 %v3642_v20, %v4300_v36  ;;  %3647 = vrcp.f32 %v2193_v56  ;;  %v2198_v36 = vpop.permute.xlu1 %2197 }
 0x772   : > { %3358 = vmatprep.subr.bf16.mxu0 %v3765_v54  ;;  %v1733_v27 = vpack.c.bf16 %v1732_v21, %v1732_v21  ;;  %v2203_v16 = vsel %vm698_vm2, %v2198_v36, 0 }
 0x773   : > { %v1851_v61 = vpack.c.bf16 %v1850_v59, %v1850_v59  ;;  %v3644_v62 = vpop.eup %3643 }
 0x774   : > { %v1970_v38 = vpop.permute.xlu0 %1969  ;;  %v1967_v1 = vmul.f32 %v3644_v62, %v4309_v44 }
 0x775   : > { %v1975_v0 = vsel %vm698_vm2, %v1970_v38, 0 }
 0x776   : > { %v1968_v41 = vpack.c.bf16 %v1967_v1, %v1967_v1 }
 0x777   : > { %v3646_v2 = vpop.eup %3645 }
 0x778   : > { %3349 = vmatmul.mubr.msk.bf16.vlgmr.msra.gmra.mrb[32].mxu0 %vm682_vm5, %v1389_v53  ;;  %v2083_v25 = vmul.f32 %v3646_v2, %v4313_v17 }
 0x779   : > { %3359 = vmatpush3.bf16.msra.mxu0 %v1513_v28  ;;  %3360 = vmatprep.mubr.msk.bf16.mxu0 %vm3766_vm1, %v3765_v54 }
 0x77a   : > { %3370 = vmatprep.subr.bf16.mxu0 %v3765_v54  ;;  %v2084_v44 = vpack.c.bf16 %v2083_v25, %v2083_v25 }
 0x77b   : > { %v3648_v22 = vpop.eup %3647 }
 0x77c   : > { %v2195_v50 = vmul.f32 %v3648_v22, %v4317_v46 }
 0x77e   : > { %v2196_v7 = vpack.c.bf16 %v2195_v50, %v2195_v50 }
 0x780   : > { %3361 = vmatmul.mubr.msk.bf16.vlgmr.msra.gmra.mrb[36].mxu0 %vm682_vm5, %v1506_v15 }
 0x781   : > { %3371 = vmatpush3.bf16.msra.mxu0 %v1627_v47  ;;  %3372 = vmatprep.mubr.msk.bf16.mxu0 %vm3766_vm1, %v3765_v54 }
 0x782   : > { %3382 = vmatprep.subr.bf16.mxu0 %v3765_v54 }
 0x788   : > { %3373 = vmatmul.mubr.msk.bf16.vlgmr.msra.gmra.mrb[40].mxu0 %vm682_vm5, %v1622_v32 }
 0x789   : > { %3383 = vmatpush3.bf16.msra.mxu0 %v1741_v52  ;;  %3384 = vmatprep.mubr.msk.bf16.mxu0 %vm3766_vm1, %v3765_v54 }
 0x78a   : > { %3394 = vmatprep.subr.bf16.mxu0 %v3765_v54 }
 0x790   : > { %3385 = vmatmul.mubr.msk.bf16.vlgmr.msra.gmra.mrb[44].mxu0 %vm682_vm5, %v1733_v27 }
 0x791   : > { %3395 = vmatpush3.bf16.msra.mxu0 %v1858_v58  ;;  %3396 = vmatprep.mubr.msk.bf16.mxu0 %vm3766_vm1, %v3765_v54 }
 0x792   : > { %3406 = vmatprep.subr.bf16.mxu0 %v3765_v54 }
 0x798   : > { %3397 = vmatmul.mubr.msk.bf16.vlgmr.msra.gmra.mrb[48].mxu0 %vm682_vm5, %v1851_v61 }
 0x799   : > { %3407 = vmatpush3.bf16.msra.mxu0 %v1975_v0  ;;  %3408 = vmatprep.mubr.msk.bf16.mxu0 %vm3766_vm1, %v3765_v54 }
 0x79a   : > { %3418 = vmatprep.subr.bf16.mxu0 %v3765_v54 }
 0x7a0   : > { %3409 = vmatmul.mubr.msk.bf16.vlgmr.msra.gmra.mrb[52].mxu0 %vm682_vm5, %v1968_v41 }
 0x7a1   : > { %3419 = vmatpush3.bf16.msra.mxu0 %v2090_v26  ;;  %3420 = vmatprep.mubr.msk.bf16.mxu0 %vm3766_vm1, %v3765_v54  ;;  %v2310_v29 = vpop.xlane.xlu1 %2309 }
 0x7a2   : > { %3430 = vmatprep.subr.bf16.mxu0 %v3765_v54  ;;  %3649 = vrcp.f32 %v2310_v29 }
 0x7a5   : > { %v2427_v11 = vpop.xlane.xlu0 %2426  ;;  %v2315_v17 = vpop.permute.xlu1 %2314 }
 0x7a6   : > { %3651 = vrcp.f32 %v2427_v11  ;;  %v2320_v10 = vsel %vm698_vm2, %v2315_v17, 0  ;;  %v3549_v17 = vld [vmem:[#allocation3] sm:$0xff]  }
 0x7a7   : > { %3460 = vmatprep.subr.bf16.mxu1 %v3549_v17 }
 0x7a8   : > { %3421 = vmatmul.mubr.msk.bf16.vlgmr.msra.gmra.mrb[56].mxu0 %vm682_vm5, %v2084_v44  ;;  %3461 = vmatpush3.bf16.msra.mxu1 %v3549_v17 }
 0x7a9   : > { %3431 = vmatpush3.bf16.msra.mxu0 %v2203_v16  ;;  %3432 = vmatprep.mubr.msk.bf16.mxu0 %vm3766_vm1, %v3765_v54  ;;  %v2432_v46 = vpop.permute.xlu0 %2431 }
 0x7aa   : > { %3442 = vmatprep.subr.bf16.mxu0 %v3765_v54  ;;  %v2437_v39 = vsel %vm698_vm2, %v2432_v46, 0 }
 0x7ac   : > { %v3650_v3 = vpop.eup %3649 }
 0x7ad   : > { %v2312_v30 = vmul.f32 %v3650_v3, %v4344_v5 }
 0x7af   : > { %v2313_v12 = vpack.c.bf16 %v2312_v30, %v2312_v30 }
 0x7b0   : > { %3433 = vmatmul.mubr.msk.bf16.vlgmr.msra.gmra.mrb[60].mxu0 %vm682_vm5, %v2196_v7  ;;  %v3652_v14 = vpop.eup %3651  ;;  %v3550_v7 = vld [vmem:[#allocation3 + $0x8] sm:$0xff]  }
 0x7b1   : > { %3443 = vmatpush3.bf16.msra.mxu0 %v2320_v10  ;;  %3444 = vmatprep.mubr.msk.bf16.mxu0 %vm3766_vm1, %v3765_v54  ;;  %v2429_v4 = vmul.f32 %v3652_v14, %v4348_v42  ;;  %v3552_v14 = vld [vmem:[#allocation3 + $0x18] sm:$0xff]  }
 0x7b2   : > { %3454 = vmatprep.subr.bf16.mxu0 %v3765_v54  ;;  %3462 = vmatprep.subr.bf16.mxu1 %v3550_v7 }
 0x7b3   : > { %v2430_v51 = vpack.c.bf16 %v2429_v4, %v2429_v4  ;;  %3463 = vmatpush3.bf16.msra.mxu1 %v3550_v7 }
 0x7b8   : > { %3445 = vmatmul.mubr.msk.bf16.vlgmr.msra.gmra.mrb[64].mxu0 %vm682_vm5, %v2313_v12  ;;  %v3551_v12 = vld [vmem:[#allocation3 + $0x10] sm:$0xff]  }
 0x7b9   : > { %3455 = vmatpush3.bf16.msra.mxu0 %v2437_v39  ;;  %3456 = vmatprep.mubr.msk.bf16.mxu0 %vm3766_vm1, %v3765_v54 }
 0x7ba   : > { %3464 = vmatprep.subr.bf16.mxu1 %v3551_v12 }
 0x7bb   : > { %3465 = vmatpush3.bf16.msra.mxu1 %v3551_v12 }
 0x7bc   : > { %3466 = vmatprep.subr.bf16.mxu1 %v3552_v14 }
 0x7bf   : > { %3467 = vmatpush3.bf16.msra.mxu1 %v3552_v14 }
 0x7c0   : > { %3457 = vmatmul.mubr.msk.bf16.vlgmr.msra.gmra.mrb[68].mxu0 %vm682_vm5, %v2430_v51 }
 0x7c1   : > { %2762 = vmatprep.mubr.bf16.mxu0 %v3764_v31 }
 0x7d1   : > { %v850_v5 = vpop.f32.mrb[12].mxu0 }
 0x7d2   : > { %v3290_v18 = vpop.f32.mrb[13].mxu0  ;;  %857 = vrot.lane.b32.xlu1 %v850_v5, %s3773_s23 }
 0x7d3   : > { %v853_v19 = vpop.f32.mrb[14].mxu0 }
 0x7d4   : > { %v3291_v6 = vpop.f32.mrb[15].mxu0 }
 0x7d9   : > { %v968_v57 = vpop.f32.mrb[16].mxu0 }
 0x7da   : > { %v3302_v33 = vpop.f32.mrb[17].mxu0  ;;  %975 = vrot.lane.b32.xlu1 %v968_v57, %s3772_s29 }
 0x7db   : > { %v971_v34 = vpop.f32.mrb[18].mxu0 }
 0x7dc   : > { %v3303_v23 = vpop.f32.mrb[19].mxu0 }
 0x806   : > { %v1086_v54 = vpop.f32.mrb[20].mxu0 }
 0x807   : > { %v3314_v35 = vpop.f32.mrb[21].mxu0  ;;  %1093 = vrot.lane.b32.xlu0 %v1086_v54, %s3771_s28 }
 0x808   : > { %v1089_v42 = vpop.f32.mrb[22].mxu0 }
 0x809   : > { %v3315_v9 = vpop.f32.mrb[23].mxu0 }
 0x83b   : > { %v1202_v8 = vpop.f32.mrb[24].mxu0 }
 0x83c   : > { %1208 = vst.msk [vmem:[#allocation2 + $0x8] sm:$0xff] %vm633_vm3, %v1202_v8  ;;  %v3326_v37 = vpop.f32.mrb[25].mxu0 }
 0x83d   : > { %v1205_v53 = vpop.f32.mrb[26].mxu0 }
 0x83e   : > { %v3327_v13 = vpop.f32.mrb[27].mxu0 }
 0x843   : > { %v1315_v28 = vpop.f32.mrb[28].mxu0 }
 0x844   : > { %v858_v40 = vpop.permute.xlu1 %857  ;;  %1322 = vrot.lane.b32.xlu1 %v1315_v28, %s3773_s23  ;;  %v3338_v43 = vpop.f32.mrb[29].mxu0 }
 0x845   : > { %861 = vst.msk [vmem:[#allocation2] sm:$0xff] %vm860_vm6, %v858_v40  ;;  %v1318_v15 = vpop.f32.mrb[30].mxu0 }
 0x846   : > { %v3339_v45 = vpop.f32.mrb[31].mxu0 }
 0x847   : > { %v3128_v45 = vld [vmem:[%s4670_s3] ss:$0 sm:$0xff] }
 0x84b   : > { %v1432_v47 = vpop.f32.mrb[32].mxu0 }
 0x84c   : > { %v976_v63 = vpop.permute.xlu1 %975  ;;  %1439 = vrot.lane.b32.xlu1 %v1432_v47, %s3772_s29  ;;  %v3350_v48 = vpop.f32.mrb[33].mxu0 }
 0x84d   : > { %979 = vst.msk [vmem:[#allocation2] sm:$0xff] %vm978_vm7, %v976_v63  ;;  %v1435_v32 = vpop.f32.mrb[34].mxu0 }
 0x84e   : > { %v3351_v49 = vpop.f32.mrb[35].mxu0 }
 0x853   : > { %v1549_v52 = vpop.f32.mrb[36].mxu0 }
 0x854   : > { %1556 = vrot.lane.b32.xlu1 %v1549_v52, %s3771_s28  ;;  %v3362_v21 = vpop.f32.mrb[37].mxu0 }
 0x855   : > { %v1552_v55 = vpop.f32.mrb[38].mxu0  ;;  %v3661_v21 = vld [vmem:[%s3930_s16] sm:$0xff] }
 0x856   : > { %v3363_v27 = vpop.f32.mrb[39].mxu0 }
 0x85b   : > { %v1663_v20 = vpop.f32.mrb[40].mxu0 }
 0x85c   : > { %1669 = vst.msk [vmem:[#allocation2 + $0x10] sm:$0xff] %vm633_vm3, %v1663_v20  ;;  %v3374_v56 = vpop.f32.mrb[41].mxu0  ;;  %v3662_v20 = vld [vmem:[%s3930_s16 + $0x10] sm:$0xff] }
 0x85d   : > { %v1666_v58 = vpop.f32.mrb[42].mxu0 }
 0x85e   : > { %v3375_v59 = vpop.f32.mrb[43].mxu0 }
 0x85f   : > { %v3663_v59 = vld [vmem:[%s3930_s16 + $0x8] sm:$0xff] }
 0x863   : > { %v1777_v60 = vpop.f32.mrb[44].mxu0 }
 0x864   : > { %1784 = vrot.lane.b32.xlu1 %v1777_v60, %s3773_s23  ;;  %v3386_v38 = vpop.f32.mrb[45].mxu0 }
 0x865   : > { %v1780_v61 = vpop.f32.mrb[46].mxu0 }
 0x866   : > { %v3387_v62 = vpop.f32.mrb[47].mxu0 }
 0x867   : > { %v3664_v62 = vld [vmem:[%s3930_s16 + $0x18] sm:$0xff]  ;;  %s3775_s16 = smov [#allocation6]  }
 0x868   : > { %s3697_s26 = sshll.u32 %s3775_s16, 4  ;;  %s3698_s26 = int_to_ptr.vmem [resolvable:$false] %s3697_s26 }
 0x869   : > { %s3699_s15 = scalar_lea.vmem %s3698_s26, 1024  ;;  %p3700_p2 = scmp.lt.s32.totalorder %s4619_s20, %s3698_s26 }
 0x86a   : > { %p3701_p3 = scmp.lt.s32.totalorder %s3699_s15, %s3693_s30 }
 0x86b   : > { %v1894_v0 = vpop.f32.mrb[48].mxu0 }
 0x86c   : > { %1901 = vrot.lane.b32.xlu0 %v1894_v0, %s3772_s29  ;;  %v3398_v1 = vpop.f32.mrb[49].mxu0  ;;  %p3702_p4 = por %p3701_p3, %p3700_p2 }
 0x86d   : > { %v1897_v36 = vpop.f32.mrb[50].mxu0 }
 0x86e   : > { %v3399_v41 = vpop.f32.mrb[51].mxu0  ;;  %p3703_p7 = pnand %p3702_p4, %p3696_p12 }
 0x873   : > { %v2011_v2 = vpop.f32.mrb[52].mxu0 }
 0x874   : > { %2018 = vrot.lane.b32.xlu0 %v2011_v2, %s3771_s28  ;;  %v3410_v26 = vpop.f32.mrb[53].mxu0 }
 0x875   : > { %v2014_v25 = vpop.f32.mrb[54].mxu0 }
 0x876   : > { %v3411_v29 = vpop.f32.mrb[55].mxu0 }
 0x879   : > { %v1094_v44 = vpop.permute.xlu0 %1093 }
 0x87a   : > { %1097 = vst.msk [vmem:[#allocation2] sm:$0xff] %vm1096_vm8, %v1094_v44 }
 0x87b   : > { %v2126_v22 = vpop.f32.mrb[56].mxu0 }
 0x87c   : > { %2132 = vst.msk [vmem:[#allocation2 + $0x18] sm:$0xff] %vm633_vm3, %v2126_v22  ;;  %v3422_v16 = vpop.f32.mrb[57].mxu0 }
 0x87d   : > { %v2129_v50 = vpop.f32.mrb[58].mxu0 }
 0x87e   : > { %v3423_v11 = vpop.f32.mrb[59].mxu0 }
 0x881   : > { %v2484_v54 = vld [vmem:[#allocation2] sm:$0xff] }
 0x883   : > { %v2239_v3 = vpop.f32.mrb[60].mxu0 }
 0x884   : > { %2246 = vrot.lane.b32.xlu1 %v2239_v3, %s3773_s23  ;;  %v3434_v10 = vpop.f32.mrb[61].mxu0  ;;  %s4617_s23 = scalar_lea.hbm %s4679_s12, %s3169_s19 }
 0x885   : > { %v2242_v30 = vpop.f32.mrb[62].mxu0 }
 0x886   : > { %v3435_v46 = vpop.f32.mrb[63].mxu0 }
 0x88b   : > { %v2356_v39 = vpop.f32.mrb[64].mxu0 }
 0x88c   : > { %2363 = vrot.lane.b32.xlu1 %v2356_v39, %s3772_s29  ;;  %v3446_v4 = vpop.f32.mrb[65].mxu0 }
 0x88d   : > { %v2359_v51 = vpop.f32.mrb[66].mxu0 }
 0x88e   : > { %v3447_v5 = vpop.f32.mrb[67].mxu0  ;;  %v3555_v51 = vld [vmem:[%s4675_s8 + $0x4] ss:$8 sps:$4 sm:$0xff]  }
 0x88f   : > { %v3553_v5 = vld [vmem:[%s4675_s8] ss:$8 sps:$4 sm:$0xff]   ;;  %2730 = vmatprep.subr.bf16.mxu0 %v3555_v51 }
 0x890   : > { %2731 = vmatpush1.bf16.msra.mxu0 %v3553_v5 }
 0x893   : > { %v2473_v18 = vpop.f32.mrb[68].mxu0 }
 0x894   : > { %2480 = vrot.lane.b32.xlu1 %v2473_v18, %s3771_s28  ;;  %v3458_v19 = vpop.f32.mrb[69].mxu0  ;;  %v3558_v18 = vld [vmem:[%s4675_s8 + $0x14] ss:$8 sps:$4 sm:$0xff]  }
 0x895   : > { %v2476_v6 = vpop.f32.mrb[70].mxu0  ;;  %v3556_v19 = vld [vmem:[%s4675_s8 + $0x10] ss:$8 sps:$4 sm:$0xff]   ;;  %2732 = vmatprep.subr.bf16.mxu0 %v3558_v18 }
 0x896   : > { %v3459_v57 = vpop.f32.mrb[71].mxu0  ;;  %2733 = vmatpush1.bf16.msra.mxu0 %v3556_v19  ;;  %v3561_v6 = vld [vmem:[%s4675_s8 + $0x24] ss:$8 sps:$4 sm:$0xff]  }
 0x897   : > { %v3559_v57 = vld [vmem:[%s4675_s8 + $0x20] ss:$8 sps:$4 sm:$0xff]   ;;  %2734 = vmatprep.subr.bf16.mxu0 %v3561_v6 }
 0x89a   : > { %2735 = vmatpush1.bf16.msra.mxu0 %v3559_v57 }
 0x8b6   : > { %v1323_v33 = vpop.permute.xlu1 %1322 }
 0x8b7   : > { %1325 = vst.msk [vmem:[#allocation2 + $0x8] sm:$0xff] %vm860_vm6, %v1323_v33  ;;  %v3564_v33 = vld [vmem:[%s4675_s8 + $0x34] ss:$8 sps:$4 sm:$0xff]  }
 0x8b8   : > { %2736 = vmatprep.subr.bf16.mxu0 %v3564_v33 }
 0x8be   : > { %v1440_v34 = vpop.permute.xlu1 %1439 }
 0x8bf   : > { %1442 = vst.msk [vmem:[#allocation2 + $0x8] sm:$0xff] %vm978_vm7, %v1440_v34  ;;  %v3562_v34 = vld [vmem:[%s4675_s8 + $0x30] ss:$8 sps:$4 sm:$0xff]  }
 0x8c0   : > { %2737 = vmatpush1.bf16.msra.mxu0 %v3562_v34 }
 0x8c6   : > { %v1557_v23 = vpop.permute.xlu1 %1556 }
 0x8c7   : > { %1559 = vst.msk [vmem:[#allocation2 + $0x8] sm:$0xff] %vm1096_vm8, %v1557_v23  ;;  %v3565_v23 = vld [vmem:[%s4677_s10 + $0x40] sm:$0xff]  }
 0x8c8   : > { %3240 = vmatprep.subr.bf16.mxu1 %v3565_v23 }
 0x8ce   : > { %v2485_v35 = vld [vmem:[#allocation2 + $0x8] sm:$0xff] }
 0x8cf   : > { %v2488_v42 = vpack.c.bf16 %v2485_v35, %v2484_v54  ;;  %v3566_v54 = vld [vmem:[%s4677_s10] sm:$0xff]   ;;  %v3567_v35 = vld [vmem:[%s4677_s10 + $0x48] sm:$0xff]  }
 0x8d1   : > { %3468 = vmatprep.mubr.msk.bf16.mxu1 %vm435_vm0, %v2488_v42  ;;  %v3568_v42 = vld [vmem:[%s4677_s10 + $0x8] sm:$0xff]  }
 0x8d6   : > { %v1785_v9 = vpop.permute.xlu1 %1784 }
 0x8d7   : > { %1787 = vst.msk [vmem:[#allocation2 + $0x10] sm:$0xff] %vm860_vm6, %v1785_v9  ;;  %v3569_v9 = vld [vmem:[%s4677_s10 + $0x50] sm:$0xff]  }
 0x8de   : > { %v1902_v8 = vpop.permute.xlu0 %1901 }
 0x8df   : > { %1904 = vst.msk [vmem:[#allocation2 + $0x10] sm:$0xff] %vm978_vm7, %v1902_v8  ;;  %v3570_v8 = vld [vmem:[%s4677_s10 + $0x10] sm:$0xff]  }
 0x8e6   : > { %v2019_v37 = vpop.permute.xlu0 %2018 }
 0x8e7   : > { %2021 = vst.msk [vmem:[#allocation2 + $0x10] sm:$0xff] %vm1096_vm8, %v2019_v37  ;;  %v3571_v37 = vld [vmem:[%s4677_s10 + $0x58] sm:$0xff]  }
 0x8ee   : > { %v2486_v40 = vld [vmem:[#allocation2 + $0x10] sm:$0xff] }
 0x8f6   : > { %v2247_v53 = vpop.permute.xlu1 %2246 }
 0x8f7   : > { %2249 = vst.msk [vmem:[#allocation2 + $0x18] sm:$0xff] %vm860_vm6, %v2247_v53  ;;  %v3572_v53 = vld [vmem:[%s4677_s10 + $0x18] sm:$0xff]  }
 0x8fe   : > { %v2364_v13 = vpop.permute.xlu1 %2363 }
 0x8ff   : > { %2366 = vst.msk [vmem:[#allocation2 + $0x18] sm:$0xff] %vm978_vm7, %v2364_v13  ;;  %v3573_v13 = vld [vmem:[%s4677_s10 + $0x60] sm:$0xff]  }
 0x906   : > { %v2481_v28 = vpop.permute.xlu1 %2480 }
 0x907   : > { %2483 = vst.msk [vmem:[#allocation2 + $0x18] sm:$0xff] %vm1096_vm8, %v2481_v28  ;;  %v3574_v28 = vld [vmem:[%s4677_s10 + $0x20] sm:$0xff]  }
 0x90e   : > { %v2487_v43 = vld [vmem:[#allocation2 + $0x18] sm:$0xff] }
 0x90f   : > { %v2489_v15 = vpack.c.bf16 %v2487_v43, %v2486_v40  ;;  %v3575_v40 = vld [vmem:[%s4677_s10 + $0x68] sm:$0xff]  }
 0x911   : > { %3469 = vmatmul.mubr.msk.bf16.vlgmr.msra.gmra.mrb[64].mxu1 %vm435_vm0, %v2489_v15 }
 0x912   : > { %3241 = vmatpush3.bf16.msra.mxu1 %v3566_v54 }
 0x913   : > { %3242 = vmatprep.subr.bf16.mxu1 %v3567_v35 }
 0x916   : > { %3243 = vmatpush3.bf16.msra.mxu1 %v3568_v42 }
 0x917   : > { %3244 = vmatprep.subr.bf16.mxu1 %v3569_v9 }
 0x91a   : > { %3245 = vmatpush3.bf16.msra.mxu1 %v3570_v8 }
 0x91b   : > { %3246 = vmatprep.subr.bf16.mxu1 %v3571_v37 }
 0x91e   : > { %3247 = vmatpush3.bf16.msra.mxu1 %v3572_v53 }
 0x91f   : > { %3248 = vmatprep.subr.bf16.mxu1 %v3573_v13 }
 0x922   : > { %3249 = vmatpush3.bf16.msra.mxu1 %v3574_v28 }
 0x923   : > { %3250 = vmatprep.subr.bf16.mxu1 %v3575_v40 }
 0x9e4   : > { %v3470_v47 = vpop.f32.mrb[64].mxu1 }
 0x9e5   : > { %v2569_v63 = vpop.f32.mrb[65].mxu1  ;;  %v2578_v48 = vadd.f32 %v3470_v47, %v3128_v45 }
 0x9e6   : > { %v2570_v32 = vadd.f32 %v3128_v45, %v2569_v63  ;;  %v3471_v49 = vpop.f32.mrb[66].mxu1 }
 0x9e7   : > { %v2572_v52 = vpop.f32.mrb[67].mxu1  ;;  %v4472_v56 = vadd.f32 %v3662_v20, %v2578_v48  ;;  %v2581_v58 = vadd.f32 %v3471_v49, %v3128_v45 }
 0x9e8   : > { %v4469_v55 = vadd.f32 %v3661_v21, %v2570_v32  ;;  %v2573_v27 = vadd.f32 %v3128_v45, %v2572_v52 }
 0x9e9   : > { %v4482_v0 = vadd.f32 %v3664_v62, %v2581_v58  ;;  %v2594_v1 = vsel %vm435_vm0, %v4472_v56, 0.0 }
 0x9ea   : > { %v4475_v60 = vadd.f32 %v3663_v59, %v2573_v27  ;;  %v2588_v38 = vsel %vm435_vm0, %v4469_v55, 0.0  ;;  %v3135_v59 = vld [vmem:[%s4673_s6] ss:$0 sm:$0xff] }
 0x9eb   : > { %2589 = vadd.xlane.f32.xlu0 %v2588_v38  ;;  %v2597_v36 = vsel %vm435_vm0, %v4482_v0, 0.0 }
 0x9ec   : > { %v2591_v61 = vsel %vm435_vm0, %v4475_v60, 0.0 }
 0x9ed   : > { %2592 = vadd.xlane.f32.xlu1 %v2591_v61 }
 0x9ef   : > { %2595 = vadd.xlane.f32.xlu0 %v2594_v1 }
 0x9f3   : > { %2598 = vadd.xlane.f32.xlu0 %v2597_v36 }
 0xa78   : > { %v2590_v41 = vpop.xlane.xlu0 %2589 }
 0xa79   : > { %v2600_v2 = vmul.f32 0.015625, %v2590_v41  ;;  %v3136_v41 = vld [vmem:[%s4674_s7] ss:$0 sm:$0xff] }
 0xa7a   : > { %v2593_v26 = vpop.xlane.xlu1 %2592 }
 0xa7b   : > { %v4489_v25 = vsub.f32 %v4469_v55, %v2600_v2  ;;  %v2601_v29 = vmul.f32 0.015625, %v2593_v26 }
 0xa7c   : > { %v2596_v44 = vpop.xlane.xlu0 %2595 }
 0xa7d   : > { %v4492_v22 = vsub.f32 %v4475_v60, %v2601_v29  ;;  %v2602_v16 = vmul.f32 0.015625, %v2596_v44  ;;  %v2608_v50 = vmul.f32 %v4489_v25, %v4489_v25 }
 0xa7f   : > { %v4497_v11 = vsub.f32 %v4472_v56, %v2602_v16  ;;  %v2612_v17 = vsel %vm435_vm0, %v2608_v50, 0.0  ;;  %v2609_v7 = vmul.f32 %v4492_v22, %v4492_v22 }
 0xa80   : > { %2613 = vadd.xlane.f32.xlu0 %v2612_v17  ;;  %v2599_v3 = vpop.xlane.xlu0 %2598 }
 0xa81   : > { %v2603_v10 = vmul.f32 0.015625, %v2599_v3  ;;  %v2615_v30 = vsel %vm435_vm0, %v2609_v7, 0.0  ;;  %v2610_v46 = vmul.f32 %v4497_v11, %v4497_v11 }
 0xa82   : > { %2616 = vadd.xlane.f32.xlu1 %v2615_v30  ;;  %v3577_v30 = vld [vmem:[%s4677_s10 + $0x70] sm:$0xff]  }
 0xa83   : > { %v4506_v12 = vsub.f32 %v4482_v0, %v2603_v10  ;;  %v2618_v14 = vsel %vm435_vm0, %v2610_v46, 0.0  ;;  %v3578_v46 = vld [vmem:[%s4677_s10 + $0x30] sm:$0xff]  }
 0xa84   : > { %2619 = vadd.xlane.f32.xlu0 %v2618_v14  ;;  %v2676_v14 = vsub.s32 0, %v4039_v24 }
 0xa85   : > { %v2611_v39 = vmul.f32 %v4506_v12, %v4506_v12 }
 0xa87   : > { %v2621_v4 = vsel %vm435_vm0, %v2611_v39, 0.0  ;;  %v2672_v39 = vld [vmem:[%s4676_s9] sm:$0x3] }
 0xa88   : > { %2622 = vadd.xlane.f32.xlu1 %v2621_v4  ;;  %v2680_v4 = vsub.s32 1, %v4039_v24  ;;  %v2677_v51 = vrot.slane %v2672_v39, %v2676_v14 }
 0xa8a   : > { %v2681_v5 = vrot.slane %v2672_v39, %v2680_v4 }
 0xb0d   : > { %v2614_v43 = vpop.xlane.xlu0 %2613 }
 0xb0e   : > { %v2624_v15 = vmul.f32 0.015625, %v2614_v43 }
 0xb0f   : > { %v2617_v45 = vpop.xlane.xlu1 %2616 }
 0xb10   : > { %v2628_v47 = vadd.f32 1e-05, %v2624_v15  ;;  %v2625_v63 = vmul.f32 0.015625, %v2617_v45 }
 0xb11   : > { %v2620_v48 = vpop.xlane.xlu0 %2619 }
 0xb12   : > { %3653 = vrsqrt.f32 %v2628_v47  ;;  %v2629_v32 = vadd.f32 1e-05, %v2625_v63  ;;  %v2626_v49 = vmul.f32 0.015625, %v2620_v48 }
 0xb14   : > { %3655 = vrsqrt.f32 %v2629_v32  ;;  %v2630_v52 = vadd.f32 1e-05, %v2626_v49 }
 0xb15   : > { %v2623_v21 = vpop.xlane.xlu1 %2622 }
 0xb16   : > { %3657 = vrsqrt.f32 %v2630_v52  ;;  %v2627_v27 = vmul.f32 0.015625, %v2623_v21 }
 0xb18   : > { %v2631_v20 = vadd.f32 1e-05, %v2627_v27 }
 0xb1a   : > { %3659 = vrsqrt.f32 %v2631_v20  ;;  %v3147_v20 = vld [vmem:[%s4678_s11] ss:$0 sm:$0xff] }
 0xb1c   : > { %v3654_v58 = vpop.eup %3653 }
 0xb1d   : > { %v2636_v38 = vmul.f32 %v3654_v58, %v4489_v25 }
 0xb1e   : > { %v3656_v61 = vpop.eup %3655 }
 0xb1f   : > { %v2647_v62 = vmul.f32 %v3135_v59, %v2636_v38  ;;  %v2637_v1 = vmul.f32 %v3656_v61, %v4492_v22 }
 0xb20   : > { %v3658_v36 = vpop.eup %3657 }
 0xb21   : > { %v2648_v2 = vmul.f32 %v3135_v59, %v2637_v1  ;;  %v2638_v26 = vmul.f32 %v3658_v36, %v4497_v11  ;;  %v2658_v29 = vadd.f32 %v3136_v41, %v2647_v62  ;;  %v3576_v11 = vld [vmem:[%s4677_s10 + $0x28] sm:$0xff]  }
 0xb22   : > { %3251 = vmatpush3.bf16.msra.mxu1 %v3576_v11 }
 0xb23   : > { %v2659_v44 = vadd.f32 %v3136_v41, %v2648_v2  ;;  %v2649_v25 = vmul.f32 %v3135_v59, %v2638_v26  ;;  %3252 = vmatprep.subr.bf16.mxu1 %v3577_v30 }
 0xb24   : > { %v3660_v16 = vpop.eup %3659 }
 0xb25   : > { %v2639_v50 = vmul.f32 %v3660_v16, %v4506_v12  ;;  %v2662_v17 = vpack.c.bf16 %v2659_v44, %v2658_v29  ;;  %v2660_v3 = vadd.f32 %v3136_v41, %v2649_v25  ;;  %v3580_v12 = vld [vmem:[%s4677_s10 + $0x38] sm:$0xff]  }
 0xb26   : > { %3253 = vmatpush3.bf16.msra.mxu1 %v3578_v46 }
 0xb27   : > { %3145 = vmatmul.mubr.msk.bf16.vlgmr.msra.gmra.mrb[72].mxu0 %vm435_vm0, %v2662_v17  ;;  %v2650_v7 = vmul.f32 %v3135_v59, %v2639_v50 }
 0xb28   : > { %2772 = vmatprep.mubr.bf16.mxu0 %v3764_v31  ;;  %v3579_v31 = vld [vmem:[%s4677_s10 + $0x78] sm:$0xff]  }
 0xb29   : > { %v2661_v22 = vadd.f32 %v3136_v41, %v2650_v7  ;;  %3254 = vmatprep.subr.bf16.mxu1 %v3579_v31 }
 0xb2a   : > { %3255 = vmatpush3.bf16.msra.mxu1 %v3580_v12 }
 0xb2b   : > { %v2663_v10 = vpack.c.bf16 %v2661_v22, %v2660_v3 }
 0xb2f   : > { %3146 = vmatmul.mubr.msk.bf16.gmra.mrb[76].mxu0 %vm435_vm0, %v2663_v10 }
 0xbfa   : > { %v2764_v18 = vpop.f32.mrb[72].mxu0 }
 0xbfb   : > { %v2765_v19 = vadd.f32 %v2764_v18, %v2677_v51  ;;  %v2766_v6 = vpop.f32.mrb[73].mxu0 }
 0xbfc   : > { %v2767_v57 = vadd.f32 %v2766_v6, %v2681_v5  ;;  %v2768_v33 = vpop.f32.mrb[74].mxu0 }
 0xbfd   : > { %v2769_v34 = vadd.f32 %v2768_v33, %v2677_v51  ;;  %v2770_v23 = vpop.f32.mrb[75].mxu0  ;;  %v2783_v35 = vmax.f32 %v2765_v19, 0.0 }
 0xbfe   : > { %v2771_v54 = vadd.f32 %v2770_v23, %v2681_v5  ;;  %v2784_v9 = vmax.f32 %v2767_v57, 0.0 }
 0xbff   : > { %v2785_v42 = vmax.f32 %v2769_v34, 0.0 }
 0xc00   : > { %v2786_v8 = vmax.f32 %v2771_v54, 0.0 }
 0xc01   : > { %v2791_v37 = vpack.c.bf16 %v2785_v42, %v2783_v35 }
 0xc02   : > { %v2792_v53 = vpack.c.bf16 %v2786_v8, %v2784_v9  ;;  %v2774_v13 = vpop.f32.mrb[76].mxu0 }
 0xc03   : > { %v2775_v28 = vadd.f32 %v2774_v13, %v2677_v51  ;;  %v2776_v40 = vpop.f32.mrb[77].mxu0 }
 0xc04   : > { %v2777_v24 = vadd.f32 %v2776_v40, %v2681_v5  ;;  %v2778_v43 = vpop.f32.mrb[78].mxu0  ;;  %2962 = vmatprep.mubr.bf16.mxu1 %v2792_v53 }
 0xc05   : > { %v2779_v15 = vadd.f32 %v2778_v43, %v2677_v51  ;;  %v2780_v45 = vpop.f32.mrb[79].mxu0  ;;  %2963 = vmatmul.mubr.bf16.vlgmr.msra.gmra.mrb[68].mxu1 %v2791_v37  ;;  %v2787_v63 = vmax.f32 %v2775_v28, 0.0 }
 0xc06   : > { %v2781_v47 = vadd.f32 %v2780_v45, %v2681_v5  ;;  %v2788_v32 = vmax.f32 %v2777_v24, 0.0 }
 0xc07   : > { %v2789_v48 = vmax.f32 %v2779_v15, 0.0 }
 0xc08   : > { %v2790_v49 = vmax.f32 %v2781_v47, 0.0 }
 0xc09   : > { %v2793_v52 = vpack.c.bf16 %v2789_v48, %v2787_v63 }
 0xc0a   : > { %v2794_v21 = vpack.c.bf16 %v2790_v49, %v2788_v32 }
 0xc0c   : > { %2970 = vmatprep.mubr.bf16.mxu1 %v2794_v21 }
 0xc0d   : > { %2971 = vmatmul.mubr.bf16.gmra.mrb[72].mxu1 %v2793_v52 }
 0xcd8   : > { %v3256_v27 = vpop.f32.mrb[68].mxu1 }
 0xcd9   : > { %v3257_v58 = vpop.f32.mrb[69].mxu1 }
 0xcda   : > { %v3258_v59 = vadd.f32 %v3257_v58, %v3256_v27  ;;  %v3259_v38 = vpop.f32.mrb[70].mxu1 }
 0xcdb   : > { %v3260_v61 = vpop.f32.mrb[71].mxu1 }
 0xcdc   : > { %v2965_v62 = vadd.f32 %v3258_v59, %v3147_v20  ;;  %v3261_v1 = vadd.f32 %v3260_v61, %v3259_v38 }
 0xcde   : > { %v2979_v36 = vadd.f32 %v2965_v62, %v4469_v55  ;;  %v2968_v41 = vadd.f32 %v3261_v1, %v3147_v20 }
 0xce0   : > { %2983 = vst.msk [vmem:[%s422_s17] sm:$0xff] %vm435_vm0, %v2979_v36  ;;  %v2980_v2 = vadd.f32 %v2968_v41, %v4475_v60  ;;  %v3262_v26 = vpop.f32.mrb[72].mxu1 }
 0xce1   : > { %v3263_v29 = vpop.f32.mrb[73].mxu1 }
 0xce2   : > { %2984 = vst.msk [vmem:[%s422_s17 + $0x8] sm:$0xff] %vm435_vm0, %v2980_v2  ;;  %v3264_v44 = vadd.f32 %v3263_v29, %v3262_v26  ;;  %v3265_v16 = vpop.f32.mrb[74].mxu1 }
 0xce3   : > { %v3266_v50 = vpop.f32.mrb[75].mxu1 }
 0xce4   : > { %v2973_v17 = vadd.f32 %v3264_v44, %v3147_v20  ;;  %v3267_v25 = vadd.f32 %v3266_v50, %v3265_v16 }
 0xce6   : > { %v2981_v55 = vadd.f32 %v2973_v17, %v4472_v56  ;;  %v2976_v7 = vadd.f32 %v3267_v25, %v3147_v20 }
 0xce8   : > { %2985 = vst.msk [vmem:[%s422_s17 + $0x10] sm:$0xff] %vm435_vm0, %v2981_v55  ;;  %v2982_v60 = vadd.f32 %v2976_v7, %v4482_v0 }
 0xcea   : > { %2986 = vst.msk [vmem:[%s422_s17 + $0x18] sm:$0xff] %vm435_vm0, %v2982_v60 }
 0xceb   : > { %3706 = shalt.err (!%p3703_p7)
}
 0xcec   : > { %s3707_s18 = scalar_lea.hbm %s4617_s23, 512  ;;  %s3711_s28 = scalar_lea.hbm %s4679_s12, 1024 }
 0xced   : > { %p3708_p8 = scmp.ne.s32.totalorder %s4617_s23, %s3707_s18  ;;  %p3712_p1 = scmp.lt.u32.totalorder %s4617_s23, %s4679_s12 }
 0xcee   : > { %p3713_p0 = scmp.lt.u32.totalorder %s3711_s28, %s3707_s18  ;;  %p3715_p6 = scmp.lt.u32.totalorder %s3707_s18, %s4617_s23 }
 0xcef   : > { %p3709_p11 = pnand %p3708_p8, %p4693_p9 }
 0xcf0   : > { %p3714_p5 = por %p3713_p0, %p3712_p1 }
 0xcf1   : > { %p3710_p13 = pneg %p3709_p11 }
 0xcf2   : > { %p3716_p10 = por %p3715_p6, %p3714_p5 }
 0xcf4   : > { %p3717_p12 = pnand %p3716_p10, %p3710_p13 }
 0xcf6   : > { %3720 = shalt.err (!%p3717_p12)
}
 0xcf7   : > { %s3776_s30 = smov 128   ;;  %s3777_s26 = smov 8  }
 0xcf8   : > { %3476 = dma.vmem_to_hbm [thread:$0]  (%p4693_p9), %s4619_s20, 512, %s4617_s23, %s4626_s25, %s3776_s30, %s3776_s30, %s3777_s26  }
 0xcf9 PF: > { %p3488_p2 = scmp.ge.s32.totalorder %s3759_s24, 2  ;;  %s3016_s15 = sand.u32 1, %s3747_s21  }
 0xcfa   : > { %p4694_p3 = scmp.ne.s32.totalorder %s4687_s14, 0  ;;  %s3017_s18 = scalar_lea.sflag [#allocation5], %s3016_s15 }
 0xcfc   : > { %p3483_p4 = pnand %p3488_p2, %p4694_p3 }
 0xcfe   : > { %3742 = dma.done.wait (!%p3483_p4), %s3017_s18, 512  }
 0xcff   : > { %3744 = vsyncadd (!%p3483_p4), %s3017_s18, 4294966784  ;;  %s4695_s17 = sld [smem:[#allocation9_spill]]  ;;  %s4696_s23 = sld [smem:[#allocation10_spill]] }
 0xd00   : > { %p23_p7 = scmp.ge.s32.totalorder %s3868_s27, 4   ;;  %s4697_s21 = smov %s3751_s22 }
 0xd01   : > { %s4699_s24 = smov %s3868_s27 }
 0xd02   :  { %25 = sbr.rel (!%p23_p7) target bundleno = 4 (0x4), region = 108 }
 0xd05   : > { %s4698_s22 = smov %s4695_s17 }
 0xd09   :  { %3022 = vsyncpa [#allocation4], 1 }
 0xd0a   :  { %3024 = vsyncpa [#allocation4 + $0x1], 1 }
 0xd0b   :  { %3025 = vsyncpa [#allocation5], 1 }
 0xd0c   :  { %3027 = vsyncpa [#allocation5 + $0x1], 1 }

</bundles_post_ra>
